<compile_context>
chip_gen: v7x
topology: tpu7x:2x2x1
jax: 0.10.0
libtpu: 0.0.40
codegen_flags: <defaults>
</compile_context>

<pallas_src>
import functools

import jax
import jax.numpy as jnp
from jax.experimental import pallas as pl
from jax.experimental.pallas import tpu as pltpu

EPS = 1e-6     # eps used by torch_L2normalize
K = 7          # conv2 kernel size
PAD = 3        # conv2 'same' padding


def _avcorr_kernel(W_img, v_ref, an_ref, vw_ref, smask_ref, bias_ref, vout_ref):
    """One grid step = one frame.

    v_ref    : (1, C, HW)    raw visual frame                       (f32)
    an_ref   : (1, C, 1)     L2-normalized audio feature            (f32)
    vw_ref   : (49, C)       folded conv3.conv2.conv1 tap weights   (f32)
    smask_ref: (49, HW)      source-side border masks               (f32)
    bias_ref : (1, HW)       folded bias map                        (f32)
    vout_ref : (1, C, HW)    visual output
    """
    HW = v_ref.shape[2]

    v = v_ref[0]                                              # (C, HW)
    an = an_ref[0]                                            # (C, 1)

    # L2-normalize visual over channels (sublane reduce, lane-dense).
    inv_norm = 1.0 / jnp.sqrt(jnp.sum(v * v, axis=0, keepdims=True) + EPS)
    vn = v * inv_norm                                         # (C, HW)

    # corr = visual_norm * audio_norm (audio broadcast over spatial lanes).
    corr = vn * an                                            # (C, HW)

    # Entire conv1+conv2+conv3 channel contraction: one small MXU matmul.
    g = jnp.dot(vw_ref[...], corr,
                preferred_element_type=jnp.float32)           # (49, HW)

    # Source-side border masks (equivalent to masking conv2 taps at the
    # destination).  One full (49, HW) VPU multiply.
    gm = g * smask_ref[...]

    # Spatial taps: 49 lane-rolls (XLU) accumulated into the 1-row logit map.
    x3 = bias_ref[...]                                        # (1, HW)
    for dy in range(K):
        for dx in range(K):
            tap = dy * K + dx
            s = (dy - PAD) * W_img + (dx - PAD)               # flat lane shift
            x3 = x3 + pltpu.roll(gm[tap:tap + 1, :], shift=(-s) % HW, axis=1)

    atten = jax.nn.sigmoid(x3)                                # (1, HW)

    # visual_out = visual_norm + visual_norm * atten.
    vout_ref[0] = (vn * (1.0 + atten)).astype(vout_ref.dtype)


def avcorr_forward(visual_nchw, audio, params, T=5):
    """visual_nchw: [BT, C, H, W], audio: [BT, C].

    Returns (visual_out [BT, C, H, W], audio_out [B, C, T]) like the PyTorch
    module.
    """
    BT, C, H, W = visual_nchw.shape
    B = BT // T
    HW = H * W
    w1, b1, w2, b2, w3, b3 = params          # torch-style layouts (see __main__)
    Cm = w1.shape[0]

    # Audio path: tiny, stays in plain XLA (also feeds the kernel's corr).
    an = audio / jnp.sqrt(jnp.sum(audio * audio, axis=1, keepdims=True) + EPS)

    # No HBM transpose: view NCHW as (BT, C, H*W) so the lane dim is H*W.
    v = visual_nchw.reshape(BT, C, HW)
    an3 = an.reshape(BT, C, 1)

    # ---- Fold conv3 . conv2 . conv1 into per-tap channel weights ----
    #   U[tap, d]   = sum_e w3[e] * w2[e, d, dy, dx]          (tap = dy*K + dx)
    #   Vw[tap, c]  = sum_d U[tap, d] * w1[d, c]
    #   b23         = <w3, b2> + b3
    #   bias_map[p] = sum_tap dstmask[tap, p] * (U @ b1)[tap] + b23
    U = jnp.einsum('e,edij->ijd', w3, w2).reshape(K * K, Cm)  # (49, Cm)
    Vw = (U @ w1).astype(jnp.float32)                         # (49, C)
    ub1 = U @ b1                                              # (49,)
    b23 = jnp.dot(w3, b2) + b3[0]                             # scalar

    # Per-tap border masks (depend only on H, W): dst-side for the bias map,
    # src-side for masking g before the lane roll inside the kernel.
    ys, xs = jnp.meshgrid(jnp.arange(H), jnp.arange(W), indexing='ij')
    ys = ys.reshape(1, HW)
    xs = xs.reshape(1, HW)
    oys = (jnp.repeat(jnp.arange(K), K) - PAD).reshape(K * K, 1)
    oxs = (jnp.tile(jnp.arange(K), K) - PAD).reshape(K * K, 1)

    def _mask(sign):
        yy = ys + sign * oys
        xx = xs + sign * oxs
        return ((yy >= 0) & (yy < H) & (xx >= 0) & (xx < W)).astype(jnp.float32)

    dmask = _mask(+1)                                         # (49, HW)
    smask = _mask(-1)                                         # (49, HW)
    bias_map = (ub1 @ dmask + b23).reshape(1, HW).astype(jnp.float32)

    kernel = functools.partial(_avcorr_kernel, W)

    vout = pl.pallas_call(
        kernel,
        out_shape=jax.ShapeDtypeStruct((BT, C, HW), visual_nchw.dtype),
        grid_spec=pltpu.PrefetchScalarGridSpec(
            num_scalar_prefetch=0,
            grid=(BT,),                                       # one frame / step
            in_specs=[
                pl.BlockSpec((1, C, HW), lambda n: (n, 0, 0)),
                pl.BlockSpec((1, C, 1), lambda n: (n, 0, 0)),
                pl.BlockSpec((K * K, C), lambda n: (0, 0)),
                pl.BlockSpec((K * K, HW), lambda n: (0, 0)),
                pl.BlockSpec((1, HW), lambda n: (0, 0)),
            ],
            out_specs=pl.BlockSpec((1, C, HW), lambda n: (n, 0, 0)),
        ),
        compiler_params=pltpu.CompilerParams(
            dimension_semantics=("parallel",)),               # frames independent
    )(v, an3, Vw, smask, bias_map)

    visual_out = vout.reshape(BT, C, H, W)
    audio_out = jnp.transpose(an.reshape(B, T, C), (0, 2, 1))
    return visual_out, audio_out


def reference_forward(visual, audio, params, T=5):
    """Pure-JAX NCHW reference mirroring the PyTorch forward (unfused convs)."""
    BT, C, H, W = visual.shape
    B = BT // T
    w1, b1, w2, b2, w3, b3 = params
    Cm = w1.shape[0]

    vn = visual / jnp.sqrt(jnp.sum(visual * visual, axis=1, keepdims=True) + EPS)
    an = audio / jnp.sqrt(jnp.sum(audio * audio, axis=1, keepdims=True) + EPS)
    corr = vn * an[:, :, None, None]

    x1 = jnp.einsum('nchw,dc->ndhw', corr, w1) + b1.reshape(1, Cm, 1, 1)
    xp = jnp.pad(x1, ((0, 0), (0, 0), (PAD, PAD), (PAD, PAD)))
    x2 = jnp.zeros_like(x1)
    for dy in range(K):
        for dx in range(K):
            tap = xp[:, :, dy:dy + H, dx:dx + W]
            x2 = x2 + jnp.einsum('nchw,dc->ndhw', tap, w2[:, :, dy, dx])
    x2 = x2 + b2.reshape(1, Cm, 1, 1)
    x3 = (jnp.sum(x2 * w3.reshape(1, Cm, 1, 1), axis=1, keepdims=True)
          + b3.reshape(1, 1, 1, 1))
    atten = jax.nn.sigmoid(x3)
    visual_out = vn + vn * atten
    audio_out = jnp.transpose(an.reshape(B, T, C), (0, 2, 1))
    return visual_out, audio_out


if __name__ == "__main__":
    key = jax.random.PRNGKey(0)
    B, T = 1, 5
    BT = B * T
    C, H, W = 16, 16, 16
    Cm = C // 4

    ks = jax.random.split(key, 8)
    visual = jax.random.normal(ks[0], (BT, C, H, W), jnp.float32)
    audio = jax.random.normal(ks[1], (BT, C), jnp.float32)

    # Deterministic synthetic parameters in torch-like layouts:
    #   conv1.weight (Cm, C, 1, 1) -> w1 (Cm, C);  conv1.bias -> b1 (Cm,)
    #   conv2.weight (Cm, Cm, 7, 7) -> w2;         conv2.bias -> b2 (Cm,)
    #   conv3.weight (1, Cm, 1, 1)  -> w3 (Cm,);   conv3.bias -> b3 (1,)
    w1 = jax.random.normal(ks[2], (Cm, C), jnp.float32) * 0.2
    b1 = jax.random.normal(ks[3], (Cm,), jnp.float32) * 0.1
    w2 = jax.random.normal(ks[4], (Cm, Cm, K, K), jnp.float32) * 0.05
    b2 = jax.random.normal(ks[5], (Cm,), jnp.float32) * 0.1
    w3 = jax.random.normal(ks[6], (Cm,), jnp.float32) * 0.2
    b3 = jax.random.normal(ks[7], (1,), jnp.float32) * 0.1
    params = (w1, b1, w2, b2, w3, b3)

    vout, aout = jax.block_until_ready(avcorr_forward(visual, audio, params, T=T))
    vref, aref = reference_forward(visual, audio, params, T=T)

    assert vout.shape == (BT, C, H, W) and aout.shape == (B, C, T)
    assert jnp.allclose(vout, vref, atol=2e-3, rtol=2e-3), \
        float(jnp.max(jnp.abs(vout - vref)))
    assert jnp.allclose(aout, aref, atol=2e-3, rtol=2e-3), \
        float(jnp.max(jnp.abs(aout - aref)))
    print("KERNEL_OK")
</pallas_src>

<mosaic_0001>
module attributes {stable_mosaic.version = 11 : i64} {
  func.func @_avcorr_kernel(%arg0: i32, %arg1: memref<1x16x256xf32, #tpu.memory_space<vmem>>, %arg2: memref<1x16x1xf32, #tpu.memory_space<vmem>>, %arg3: memref<49x16xf32, #tpu.memory_space<vmem>>, %arg4: memref<49x256xf32, #tpu.memory_space<vmem>>, %arg5: memref<1x256xf32, #tpu.memory_space<vmem>>, %arg6: memref<1x16x256xf32, #tpu.memory_space<vmem>>) attributes {dimension_semantics = [#tpu.dimension_semantics<parallel>], iteration_bounds = array<i64: 5>, scalar_prefetch = 0 : i64, scratch_operands = 0 : i64, tpu.core_type = #tpu.core_type<tc>, window_params = [{transform_indices = @transform_0, window_bounds = array<i64: 1, 16, 256>}, {transform_indices = @transform_1, window_bounds = array<i64: 1, 16, 1>}, {pipeline_mode = #tpu.pipeline_mode<synchronous>, transform_indices = @transform_2, window_bounds = array<i64: 49, 16>}, {pipeline_mode = #tpu.pipeline_mode<synchronous>, transform_indices = @transform_3, window_bounds = array<i64: 49, 256>}, {pipeline_mode = #tpu.pipeline_mode<synchronous>, transform_indices = @transform_4, window_bounds = array<i64: 1, 256>}, {transform_indices = @transform_5, window_bounds = array<i64: 1, 16, 256>}]} {
    %c0 = arith.constant 0 : index
    %c0_0 = arith.constant 0 : index
    %c0_1 = arith.constant 0 : index
    %0 = vector.load %arg1[%c0, %c0_0, %c0_1] : memref<1x16x256xf32, #tpu.memory_space<vmem>>, vector<1x16x256xf32>
    %1 = vector.shape_cast %0 : vector<1x16x256xf32> to vector<16x256xf32>
    %c0_2 = arith.constant 0 : index
    %c0_3 = arith.constant 0 : index
    %c0_4 = arith.constant 0 : index
    %2 = vector.load %arg2[%c0_2, %c0_3, %c0_4] : memref<1x16x1xf32, #tpu.memory_space<vmem>>, vector<1x16x1xf32>
    %3 = vector.shape_cast %2 : vector<1x16x1xf32> to vector<16x1xf32>
    %4 = arith.mulf %1, %1 : vector<16x256xf32>
    %cst = arith.constant dense<0.000000e+00> : vector<256xf32>
    %5 = vector.multi_reduction <add>, %4, %cst [0] : vector<16x256xf32> to vector<256xf32>
    %6 = vector.shape_cast %5 : vector<256xf32> to vector<1x256xf32>
    %cst_5 = arith.constant 9.99999997E-7 : f32
    %7 = vector.broadcast %cst_5 : f32 to vector<1x256xf32>
    %8 = arith.addf %6, %7 : vector<1x256xf32>
    %9 = math.sqrt %8 : vector<1x256xf32>
    %cst_6 = arith.constant 1.000000e+00 : f32
    %10 = vector.broadcast %cst_6 : f32 to vector<1x256xf32>
    %11 = arith.divf %10, %9 : vector<1x256xf32>
    %12 = vector.broadcast %11 : vector<1x256xf32> to vector<16x256xf32>
    %13 = arith.mulf %1, %12 : vector<16x256xf32>
    %14 = vector.broadcast %3 : vector<16x1xf32> to vector<16x256xf32>
    %15 = arith.mulf %13, %14 : vector<16x256xf32>
    %c0_7 = arith.constant 0 : index
    %c0_8 = arith.constant 0 : index
    %16 = vector.load %arg3[%c0_7, %c0_8] : memref<49x16xf32, #tpu.memory_space<vmem>>, vector<49x16xf32>
    %cst_9 = arith.constant dense<0.000000e+00> : vector<49x256xf32>
    %17 = tpu.matmul %16, %15, %cst_9 {dimension_numbers = #tpu.dot_dimension_numbers<[1], [0], [0], [1], [0, 0, 1, 1], [], []>} : vector<49x16xf32>, vector<16x256xf32>, vector<49x256xf32> -> vector<49x256xf32>
    %c0_10 = arith.constant 0 : index
    %c0_11 = arith.constant 0 : index
    %18 = vector.load %arg4[%c0_10, %c0_11] : memref<49x256xf32, #tpu.memory_space<vmem>>, vector<49x256xf32>
    %19 = arith.mulf %17, %18 : vector<49x256xf32>
    %c0_12 = arith.constant 0 : index
    %c0_13 = arith.constant 0 : index
    %20 = vector.load %arg5[%c0_12, %c0_13] : memref<1x256xf32, #tpu.memory_space<vmem>>, vector<1x256xf32>
    %21 = vector.extract_strided_slice %19 {offsets = [0, 0], sizes = [1, 256], strides = [1, 1]} : vector<49x256xf32> to vector<1x256xf32>
    %c51_i32 = arith.constant 51 : i32
    %22 = tpu.dynamic_rotate %21 by %c51_i32 dim 1 : vector<1x256xf32>, i32 -> vector<1x256xf32>
    %23 = arith.addf %20, %22 : vector<1x256xf32>
    %24 = vector.extract_strided_slice %19 {offsets = [1, 0], sizes = [1, 256], strides = [1, 1]} : vector<49x256xf32> to vector<1x256xf32>
    %c50_i32 = arith.constant 50 : i32
    %25 = tpu.dynamic_rotate %24 by %c50_i32 dim 1 : vector<1x256xf32>, i32 -> vector<1x256xf32>
    %26 = arith.addf %23, %25 : vector<1x256xf32>
    %27 = vector.extract_strided_slice %19 {offsets = [2, 0], sizes = [1, 256], strides = [1, 1]} : vector<49x256xf32> to vector<1x256xf32>
    %c49_i32 = arith.constant 49 : i32
    %28 = tpu.dynamic_rotate %27 by %c49_i32 dim 1 : vector<1x256xf32>, i32 -> vector<1x256xf32>
    %29 = arith.addf %26, %28 : vector<1x256xf32>
    %30 = vector.extract_strided_slice %19 {offsets = [3, 0], sizes = [1, 256], strides = [1, 1]} : vector<49x256xf32> to vector<1x256xf32>
    %c48_i32 = arith.constant 48 : i32
    %31 = tpu.dynamic_rotate %30 by %c48_i32 dim 1 : vector<1x256xf32>, i32 -> vector<1x256xf32>
    %32 = arith.addf %29, %31 : vector<1x256xf32>
    %33 = vector.extract_strided_slice %19 {offsets = [4, 0], sizes = [1, 256], strides = [1, 1]} : vector<49x256xf32> to vector<1x256xf32>
    %c47_i32 = arith.constant 47 : i32
    %34 = tpu.dynamic_rotate %33 by %c47_i32 dim 1 : vector<1x256xf32>, i32 -> vector<1x256xf32>
    %35 = arith.addf %32, %34 : vector<1x256xf32>
    %36 = vector.extract_strided_slice %19 {offsets = [5, 0], sizes = [1, 256], strides = [1, 1]} : vector<49x256xf32> to vector<1x256xf32>
    %c46_i32 = arith.constant 46 : i32
    %37 = tpu.dynamic_rotate %36 by %c46_i32 dim 1 : vector<1x256xf32>, i32 -> vector<1x256xf32>
    %38 = arith.addf %35, %37 : vector<1x256xf32>
    %39 = vector.extract_strided_slice %19 {offsets = [6, 0], sizes = [1, 256], strides = [1, 1]} : vector<49x256xf32> to vector<1x256xf32>
    %c45_i32 = arith.constant 45 : i32
    %40 = tpu.dynamic_rotate %39 by %c45_i32 dim 1 : vector<1x256xf32>, i32 -> vector<1x256xf32>
    %41 = arith.addf %38, %40 : vector<1x256xf32>
    %42 = vector.extract_strided_slice %19 {offsets = [7, 0], sizes = [1, 256], strides = [1, 1]} : vector<49x256xf32> to vector<1x256xf32>
    %c35_i32 = arith.constant 35 : i32
    %43 = tpu.dynamic_rotate %42 by %c35_i32 dim 1 : vector<1x256xf32>, i32 -> vector<1x256xf32>
    %44 = arith.addf %41, %43 : vector<1x256xf32>
    %45 = vector.extract_strided_slice %19 {offsets = [8, 0], sizes = [1, 256], strides = [1, 1]} : vector<49x256xf32> to vector<1x256xf32>
    %c34_i32 = arith.constant 34 : i32
    %46 = tpu.dynamic_rotate %45 by %c34_i32 dim 1 : vector<1x256xf32>, i32 -> vector<1x256xf32>
    %47 = arith.addf %44, %46 : vector<1x256xf32>
    %48 = vector.extract_strided_slice %19 {offsets = [9, 0], sizes = [1, 256], strides = [1, 1]} : vector<49x256xf32> to vector<1x256xf32>
    %c33_i32 = arith.constant 33 : i32
    %49 = tpu.dynamic_rotate %48 by %c33_i32 dim 1 : vector<1x256xf32>, i32 -> vector<1x256xf32>
    %50 = arith.addf %47, %49 : vector<1x256xf32>
    %51 = vector.extract_strided_slice %19 {offsets = [10, 0], sizes = [1, 256], strides = [1, 1]} : vector<49x256xf32> to vector<1x256xf32>
    %c32_i32 = arith.constant 32 : i32
    %52 = tpu.dynamic_rotate %51 by %c32_i32 dim 1 : vector<1x256xf32>, i32 -> vector<1x256xf32>
    %53 = arith.addf %50, %52 : vector<1x256xf32>
    %54 = vector.extract_strided_slice %19 {offsets = [11, 0], sizes = [1, 256], strides = [1, 1]} : vector<49x256xf32> to vector<1x256xf32>
    %c31_i32 = arith.constant 31 : i32
    %55 = tpu.dynamic_rotate %54 by %c31_i32 dim 1 : vector<1x256xf32>, i32 -> vector<1x256xf32>
    %56 = arith.addf %53, %55 : vector<1x256xf32>
    %57 = vector.extract_strided_slice %19 {offsets = [12, 0], sizes = [1, 256], strides = [1, 1]} : vector<49x256xf32> to vector<1x256xf32>
    %c30_i32 = arith.constant 30 : i32
    %58 = tpu.dynamic_rotate %57 by %c30_i32 dim 1 : vector<1x256xf32>, i32 -> vector<1x256xf32>
    %59 = arith.addf %56, %58 : vector<1x256xf32>
    %60 = vector.extract_strided_slice %19 {offsets = [13, 0], sizes = [1, 256], strides = [1, 1]} : vector<49x256xf32> to vector<1x256xf32>
    %c29_i32 = arith.constant 29 : i32
    %61 = tpu.dynamic_rotate %60 by %c29_i32 dim 1 : vector<1x256xf32>, i32 -> vector<1x256xf32>
    %62 = arith.addf %59, %61 : vector<1x256xf32>
    %63 = vector.extract_strided_slice %19 {offsets = [14, 0], sizes = [1, 256], strides = [1, 1]} : vector<49x256xf32> to vector<1x256xf32>
    %c19_i32 = arith.constant 19 : i32
    %64 = tpu.dynamic_rotate %63 by %c19_i32 dim 1 : vector<1x256xf32>, i32 -> vector<1x256xf32>
    %65 = arith.addf %62, %64 : vector<1x256xf32>
    %66 = vector.extract_strided_slice %19 {offsets = [15, 0], sizes = [1, 256], strides = [1, 1]} : vector<49x256xf32> to vector<1x256xf32>
    %c18_i32 = arith.constant 18 : i32
    %67 = tpu.dynamic_rotate %66 by %c18_i32 dim 1 : vector<1x256xf32>, i32 -> vector<1x256xf32>
    %68 = arith.addf %65, %67 : vector<1x256xf32>
    %69 = vector.extract_strided_slice %19 {offsets = [16, 0], sizes = [1, 256], strides = [1, 1]} : vector<49x256xf32> to vector<1x256xf32>
    %c17_i32 = arith.constant 17 : i32
    %70 = tpu.dynamic_rotate %69 by %c17_i32 dim 1 : vector<1x256xf32>, i32 -> vector<1x256xf32>
    %71 = arith.addf %68, %70 : vector<1x256xf32>
    %72 = vector.extract_strided_slice %19 {offsets = [17, 0], sizes = [1, 256], strides = [1, 1]} : vector<49x256xf32> to vector<1x256xf32>
    %c16_i32 = arith.constant 16 : i32
    %73 = tpu.dynamic_rotate %72 by %c16_i32 dim 1 : vector<1x256xf32>, i32 -> vector<1x256xf32>
    %74 = arith.addf %71, %73 : vector<1x256xf32>
    %75 = vector.extract_strided_slice %19 {offsets = [18, 0], sizes = [1, 256], strides = [1, 1]} : vector<49x256xf32> to vector<1x256xf32>
    %c15_i32 = arith.constant 15 : i32
    %76 = tpu.dynamic_rotate %75 by %c15_i32 dim 1 : vector<1x256xf32>, i32 -> vector<1x256xf32>
    %77 = arith.addf %74, %76 : vector<1x256xf32>
    %78 = vector.extract_strided_slice %19 {offsets = [19, 0], sizes = [1, 256], strides = [1, 1]} : vector<49x256xf32> to vector<1x256xf32>
    %c14_i32 = arith.constant 14 : i32
    %79 = tpu.dynamic_rotate %78 by %c14_i32 dim 1 : vector<1x256xf32>, i32 -> vector<1x256xf32>
    %80 = arith.addf %77, %79 : vector<1x256xf32>
    %81 = vector.extract_strided_slice %19 {offsets = [20, 0], sizes = [1, 256], strides = [1, 1]} : vector<49x256xf32> to vector<1x256xf32>
    %c13_i32 = arith.constant 13 : i32
    %82 = tpu.dynamic_rotate %81 by %c13_i32 dim 1 : vector<1x256xf32>, i32 -> vector<1x256xf32>
    %83 = arith.addf %80, %82 : vector<1x256xf32>
    %84 = vector.extract_strided_slice %19 {offsets = [21, 0], sizes = [1, 256], strides = [1, 1]} : vector<49x256xf32> to vector<1x256xf32>
    %c3_i32 = arith.constant 3 : i32
    %85 = tpu.dynamic_rotate %84 by %c3_i32 dim 1 : vector<1x256xf32>, i32 -> vector<1x256xf32>
    %86 = arith.addf %83, %85 : vector<1x256xf32>
    %87 = vector.extract_strided_slice %19 {offsets = [22, 0], sizes = [1, 256], strides = [1, 1]} : vector<49x256xf32> to vector<1x256xf32>
    %c2_i32 = arith.constant 2 : i32
    %88 = tpu.dynamic_rotate %87 by %c2_i32 dim 1 : vector<1x256xf32>, i32 -> vector<1x256xf32>
    %89 = arith.addf %86, %88 : vector<1x256xf32>
    %90 = vector.extract_strided_slice %19 {offsets = [23, 0], sizes = [1, 256], strides = [1, 1]} : vector<49x256xf32> to vector<1x256xf32>
    %c1_i32 = arith.constant 1 : i32
    %91 = tpu.dynamic_rotate %90 by %c1_i32 dim 1 : vector<1x256xf32>, i32 -> vector<1x256xf32>
    %92 = arith.addf %89, %91 : vector<1x256xf32>
    %93 = vector.extract_strided_slice %19 {offsets = [24, 0], sizes = [1, 256], strides = [1, 1]} : vector<49x256xf32> to vector<1x256xf32>
    %c0_i32 = arith.constant 0 : i32
    %94 = tpu.dynamic_rotate %93 by %c0_i32 dim 1 : vector<1x256xf32>, i32 -> vector<1x256xf32>
    %95 = arith.addf %92, %94 : vector<1x256xf32>
    %96 = vector.extract_strided_slice %19 {offsets = [25, 0], sizes = [1, 256], strides = [1, 1]} : vector<49x256xf32> to vector<1x256xf32>
    %c255_i32 = arith.constant 255 : i32
    %97 = tpu.dynamic_rotate %96 by %c255_i32 dim 1 : vector<1x256xf32>, i32 -> vector<1x256xf32>
    %98 = arith.addf %95, %97 : vector<1x256xf32>
    %99 = vector.extract_strided_slice %19 {offsets = [26, 0], sizes = [1, 256], strides = [1, 1]} : vector<49x256xf32> to vector<1x256xf32>
    %c254_i32 = arith.constant 254 : i32
    %100 = tpu.dynamic_rotate %99 by %c254_i32 dim 1 : vector<1x256xf32>, i32 -> vector<1x256xf32>
    %101 = arith.addf %98, %100 : vector<1x256xf32>
    %102 = vector.extract_strided_slice %19 {offsets = [27, 0], sizes = [1, 256], strides = [1, 1]} : vector<49x256xf32> to vector<1x256xf32>
    %c253_i32 = arith.constant 253 : i32
    %103 = tpu.dynamic_rotate %102 by %c253_i32 dim 1 : vector<1x256xf32>, i32 -> vector<1x256xf32>
    %104 = arith.addf %101, %103 : vector<1x256xf32>
    %105 = vector.extract_strided_slice %19 {offsets = [28, 0], sizes = [1, 256], strides = [1, 1]} : vector<49x256xf32> to vector<1x256xf32>
    %c243_i32 = arith.constant 243 : i32
    %106 = tpu.dynamic_rotate %105 by %c243_i32 dim 1 : vector<1x256xf32>, i32 -> vector<1x256xf32>
    %107 = arith.addf %104, %106 : vector<1x256xf32>
    %108 = vector.extract_strided_slice %19 {offsets = [29, 0], sizes = [1, 256], strides = [1, 1]} : vector<49x256xf32> to vector<1x256xf32>
    %c242_i32 = arith.constant 242 : i32
    %109 = tpu.dynamic_rotate %108 by %c242_i32 dim 1 : vector<1x256xf32>, i32 -> vector<1x256xf32>
    %110 = arith.addf %107, %109 : vector<1x256xf32>
    %111 = vector.extract_strided_slice %19 {offsets = [30, 0], sizes = [1, 256], strides = [1, 1]} : vector<49x256xf32> to vector<1x256xf32>
    %c241_i32 = arith.constant 241 : i32
    %112 = tpu.dynamic_rotate %111 by %c241_i32 dim 1 : vector<1x256xf32>, i32 -> vector<1x256xf32>
    %113 = arith.addf %110, %112 : vector<1x256xf32>
    %114 = vector.extract_strided_slice %19 {offsets = [31, 0], sizes = [1, 256], strides = [1, 1]} : vector<49x256xf32> to vector<1x256xf32>
    %c240_i32 = arith.constant 240 : i32
    %115 = tpu.dynamic_rotate %114 by %c240_i32 dim 1 : vector<1x256xf32>, i32 -> vector<1x256xf32>
    %116 = arith.addf %113, %115 : vector<1x256xf32>
    %117 = vector.extract_strided_slice %19 {offsets = [32, 0], sizes = [1, 256], strides = [1, 1]} : vector<49x256xf32> to vector<1x256xf32>
    %c239_i32 = arith.constant 239 : i32
    %118 = tpu.dynamic_rotate %117 by %c239_i32 dim 1 : vector<1x256xf32>, i32 -> vector<1x256xf32>
    %119 = arith.addf %116, %118 : vector<1x256xf32>
    %120 = vector.extract_strided_slice %19 {offsets = [33, 0], sizes = [1, 256], strides = [1, 1]} : vector<49x256xf32> to vector<1x256xf32>
    %c238_i32 = arith.constant 238 : i32
    %121 = tpu.dynamic_rotate %120 by %c238_i32 dim 1 : vector<1x256xf32>, i32 -> vector<1x256xf32>
    %122 = arith.addf %119, %121 : vector<1x256xf32>
    %123 = vector.extract_strided_slice %19 {offsets = [34, 0], sizes = [1, 256], strides = [1, 1]} : vector<49x256xf32> to vector<1x256xf32>
    %c237_i32 = arith.constant 237 : i32
    %124 = tpu.dynamic_rotate %123 by %c237_i32 dim 1 : vector<1x256xf32>, i32 -> vector<1x256xf32>
    %125 = arith.addf %122, %124 : vector<1x256xf32>
    %126 = vector.extract_strided_slice %19 {offsets = [35, 0], sizes = [1, 256], strides = [1, 1]} : vector<49x256xf32> to vector<1x256xf32>
    %c227_i32 = arith.constant 227 : i32
    %127 = tpu.dynamic_rotate %126 by %c227_i32 dim 1 : vector<1x256xf32>, i32 -> vector<1x256xf32>
    %128 = arith.addf %125, %127 : vector<1x256xf32>
    %129 = vector.extract_strided_slice %19 {offsets = [36, 0], sizes = [1, 256], strides = [1, 1]} : vector<49x256xf32> to vector<1x256xf32>
    %c226_i32 = arith.constant 226 : i32
    %130 = tpu.dynamic_rotate %129 by %c226_i32 dim 1 : vector<1x256xf32>, i32 -> vector<1x256xf32>
    %131 = arith.addf %128, %130 : vector<1x256xf32>
    %132 = vector.extract_strided_slice %19 {offsets = [37, 0], sizes = [1, 256], strides = [1, 1]} : vector<49x256xf32> to vector<1x256xf32>
    %c225_i32 = arith.constant 225 : i32
    %133 = tpu.dynamic_rotate %132 by %c225_i32 dim 1 : vector<1x256xf32>, i32 -> vector<1x256xf32>
    %134 = arith.addf %131, %133 : vector<1x256xf32>
    %135 = vector.extract_strided_slice %19 {offsets = [38, 0], sizes = [1, 256], strides = [1, 1]} : vector<49x256xf32> to vector<1x256xf32>
    %c224_i32 = arith.constant 224 : i32
    %136 = tpu.dynamic_rotate %135 by %c224_i32 dim 1 : vector<1x256xf32>, i32 -> vector<1x256xf32>
    %137 = arith.addf %134, %136 : vector<1x256xf32>
    %138 = vector.extract_strided_slice %19 {offsets = [39, 0], sizes = [1, 256], strides = [1, 1]} : vector<49x256xf32> to vector<1x256xf32>
    %c223_i32 = arith.constant 223 : i32
    %139 = tpu.dynamic_rotate %138 by %c223_i32 dim 1 : vector<1x256xf32>, i32 -> vector<1x256xf32>
    %140 = arith.addf %137, %139 : vector<1x256xf32>
    %141 = vector.extract_strided_slice %19 {offsets = [40, 0], sizes = [1, 256], strides = [1, 1]} : vector<49x256xf32> to vector<1x256xf32>
    %c222_i32 = arith.constant 222 : i32
    %142 = tpu.dynamic_rotate %141 by %c222_i32 dim 1 : vector<1x256xf32>, i32 -> vector<1x256xf32>
    %143 = arith.addf %140, %142 : vector<1x256xf32>
    %144 = vector.extract_strided_slice %19 {offsets = [41, 0], sizes = [1, 256], strides = [1, 1]} : vector<49x256xf32> to vector<1x256xf32>
    %c221_i32 = arith.constant 221 : i32
    %145 = tpu.dynamic_rotate %144 by %c221_i32 dim 1 : vector<1x256xf32>, i32 -> vector<1x256xf32>
    %146 = arith.addf %143, %145 : vector<1x256xf32>
    %147 = vector.extract_strided_slice %19 {offsets = [42, 0], sizes = [1, 256], strides = [1, 1]} : vector<49x256xf32> to vector<1x256xf32>
    %c211_i32 = arith.constant 211 : i32
    %148 = tpu.dynamic_rotate %147 by %c211_i32 dim 1 : vector<1x256xf32>, i32 -> vector<1x256xf32>
    %149 = arith.addf %146, %148 : vector<1x256xf32>
    %150 = vector.extract_strided_slice %19 {offsets = [43, 0], sizes = [1, 256], strides = [1, 1]} : vector<49x256xf32> to vector<1x256xf32>
    %c210_i32 = arith.constant 210 : i32
    %151 = tpu.dynamic_rotate %150 by %c210_i32 dim 1 : vector<1x256xf32>, i32 -> vector<1x256xf32>
    %152 = arith.addf %149, %151 : vector<1x256xf32>
    %153 = vector.extract_strided_slice %19 {offsets = [44, 0], sizes = [1, 256], strides = [1, 1]} : vector<49x256xf32> to vector<1x256xf32>
    %c209_i32 = arith.constant 209 : i32
    %154 = tpu.dynamic_rotate %153 by %c209_i32 dim 1 : vector<1x256xf32>, i32 -> vector<1x256xf32>
    %155 = arith.addf %152, %154 : vector<1x256xf32>
    %156 = vector.extract_strided_slice %19 {offsets = [45, 0], sizes = [1, 256], strides = [1, 1]} : vector<49x256xf32> to vector<1x256xf32>
    %c208_i32 = arith.constant 208 : i32
    %157 = tpu.dynamic_rotate %156 by %c208_i32 dim 1 : vector<1x256xf32>, i32 -> vector<1x256xf32>
    %158 = arith.addf %155, %157 : vector<1x256xf32>
    %159 = vector.extract_strided_slice %19 {offsets = [46, 0], sizes = [1, 256], strides = [1, 1]} : vector<49x256xf32> to vector<1x256xf32>
    %c207_i32 = arith.constant 207 : i32
    %160 = tpu.dynamic_rotate %159 by %c207_i32 dim 1 : vector<1x256xf32>, i32 -> vector<1x256xf32>
    %161 = arith.addf %158, %160 : vector<1x256xf32>
    %162 = vector.extract_strided_slice %19 {offsets = [47, 0], sizes = [1, 256], strides = [1, 1]} : vector<49x256xf32> to vector<1x256xf32>
    %c206_i32 = arith.constant 206 : i32
    %163 = tpu.dynamic_rotate %162 by %c206_i32 dim 1 : vector<1x256xf32>, i32 -> vector<1x256xf32>
    %164 = arith.addf %161, %163 : vector<1x256xf32>
    %165 = vector.extract_strided_slice %19 {offsets = [48, 0], sizes = [1, 256], strides = [1, 1]} : vector<49x256xf32> to vector<1x256xf32>
    %c205_i32 = arith.constant 205 : i32
    %166 = tpu.dynamic_rotate %165 by %c205_i32 dim 1 : vector<1x256xf32>, i32 -> vector<1x256xf32>
    %167 = arith.addf %164, %166 : vector<1x256xf32>
    %168 = arith.negf %167 : vector<1x256xf32>
    %169 = math.exp %168 : vector<1x256xf32>
    %cst_14 = arith.constant 1.000000e+00 : f32
    %170 = vector.broadcast %cst_14 : f32 to vector<1x256xf32>
    %171 = arith.addf %170, %169 : vector<1x256xf32>
    %172 = arith.divf %170, %171 : vector<1x256xf32>
    %cst_15 = arith.constant 1.000000e+00 : f32
    %173 = vector.broadcast %cst_15 : f32 to vector<1x256xf32>
    %174 = arith.addf %173, %172 : vector<1x256xf32>
    %175 = vector.broadcast %174 : vector<1x256xf32> to vector<16x256xf32>
    %176 = arith.mulf %13, %175 : vector<16x256xf32>
    %c0_16 = arith.constant 0 : index
    %c0_17 = arith.constant 0 : index
    %c0_18 = arith.constant 0 : index
    %177 = vector.load %arg6[%c0_16, %c0_17, %c0_18] : memref<1x16x256xf32, #tpu.memory_space<vmem>>, vector<1x16x256xf32>
    %178 = vector.shape_cast %177 : vector<1x16x256xf32> to vector<16x256xf32>
    %179 = vector.shape_cast %176 : vector<16x256xf32> to vector<1x16x256xf32>
    tpu.vector_store %arg6[%c0_16, %c0_17, %c0_18], %179 {strides = array<i32>} : memref<1x16x256xf32, #tpu.memory_space<vmem>>, vector<1x16x256xf32>,
    return
  }
  func.func @transform_0(%arg0: i32) -> (i32, i32, i32) {
    %c0_i32 = arith.constant 0 : i32
    %c0_i32_0 = arith.constant 0 : i32
    %c0_i32_1 = arith.constant 0 : i32
    return %arg0, %c0_i32, %c0_i32_0 : i32, i32, i32
  }
  func.func @transform_1(%arg0: i32) -> (i32, i32, i32) {
    %c0_i32 = arith.constant 0 : i32
    %c0_i32_0 = arith.constant 0 : i32
    %c0_i32_1 = arith.constant 0 : i32
    return %arg0, %c0_i32, %c0_i32_0 : i32, i32, i32
  }
  func.func @transform_2(%arg0: i32) -> (i32, i32) {
    %c0_i32 = arith.constant 0 : i32
    %c0_i32_0 = arith.constant 0 : i32
    %c0_i32_1 = arith.constant 0 : i32
    return %c0_i32, %c0_i32_0 : i32, i32
  }
  func.func @transform_3(%arg0: i32) -> (i32, i32) {
    %c0_i32 = arith.constant 0 : i32
    %c0_i32_0 = arith.constant 0 : i32
    %c0_i32_1 = arith.constant 0 : i32
    return %c0_i32, %c0_i32_0 : i32, i32
  }
  func.func @transform_4(%arg0: i32) -> (i32, i32) {
    %c0_i32 = arith.constant 0 : i32
    %c0_i32_0 = arith.constant 0 : i32
    %c0_i32_1 = arith.constant 0 : i32
    return %c0_i32, %c0_i32_0 : i32, i32
  }
  func.func @transform_5(%arg0: i32) -> (i32, i32, i32) {
    %c0_i32 = arith.constant 0 : i32
    %c0_i32_0 = arith.constant 0 : i32
    %c0_i32_1 = arith.constant 0 : i32
    return %arg0, %c0_i32, %c0_i32_0 : i32, i32, i32
  }
}

</mosaic_0001>

<bundles_post_ra>
// kernel: tpu_custom_call.1
= control target key start
LH: loop header
LB: loop body
LE: loop exit
PB: predicated region body
PF: predicated region fallthrough
CT: control target
= control target key end

     0   :  { %10 = vsyncpa [#allocation3], 0  ;;  %s2997_s0 = inlined_call_operand.hbm [shape: f32[5,16,256], index: 0, kind: input, shape index: {}]   ;;  %s2998_s1 = inlined_call_operand.vmem [shape: f32[5,16,1], index: 1, kind: input, shape index: {}]   ;;  %s2999_s2 = inlined_call_operand.vmem [shape: f32[49,16], index: 2, kind: input, shape index: {}]   ;;  %s3000_s3 = inlined_call_operand.vmem [shape: f32[49,256], index: 3, kind: input, shape index: {}]   ;;  %s3001_s4 = inlined_call_operand.vmem [shape: f32[1,256], index: 4, kind: input, shape index: {}]   ;;  %s3002_s5 = inlined_call_operand.hbm [shape: f32[5,16,256], index: 5, kind: output, shape index: {}]  }
   0x1   :  { %12 = vsyncpa [#allocation3 + $0x1], 0 }
   0x2   :  { %13 = vsyncpa [#allocation4], 0 }
   0x3   :  { %15 = vsyncpa [#allocation4 + $0x1], 0  ;;  %s2392_s18 = smov 0   ;;  %s2394_s19 = smov 0  }
   0x4   :  { %s2396_s20 = smov 0   ;;  %s2398_s21 = smov 0  }
   0x5 LB: > { %s2413_s22 = sadd.s32 4294967295, %s2304_s21   ;;  %s2062_s23 = sadd.s32 4294967294, %s2304_s21   ;;  %s2304_s21 = sphi %s2398_s21, %s3015_s21   ;;  %s2300_s20 = sphi %s2396_s20, %s3014_s20   ;;  %s2296_s19 = sphi %s2394_s19, %s3013_s19   ;;  %s2292_s18 = sphi %s2392_s18, %s3012_s18  }
   0x6   : > { %s2417_s24 = sadd.s32 1, %s2304_s21   ;;  %s28_s25 = sadd.s32 1, %s2300_s20 }
   0x7   : > { %s25_s26 = ssub.s32 %s2304_s21, %s2417_s24  ;;  %p35_p0 = scmp.ne.s32.totalorder %s2300_s20, %s2296_s19 }
   0x8   : > { %p26_p1 = scmp.eq.s32.totalorder %s25_s26, 0  ;;  %p36_p2 = scmp.eq.s32.totalorder %s2304_s21, 0 }
   0x9   : > { %p41_p3 = scmp.ne.s32.totalorder %s2296_s19, %s2292_s18  ;;  %p42_p4 = scmp.eq.s32.totalorder %s2413_s22, 0 }
   0xa   : > { %s2429_s27 = scalar_select %p26_p1, %s2300_s20, %s28_s25  }
   0xb   : > { %p2431_p5 = por %p36_p2, %p35_p0  ;;  %p2435_p6 = por %p42_p4, %p41_p3 }
   0xc   : > { %p154_p7 = scmp.eq.s32.totalorder %s2413_s22, 4  ;;  %p160_p8 = scmp.eq.s32.totalorder %s2062_s23, 4 }
   0xd   : > { %p2107_p9 = scmp.lt.s32.totalorder %s2304_s21, 5  ;;  %s189_s7 = sand.u32 1, %s2300_s20  }
   0xe   : > { %p2441_p10 = por %p154_p7, %p35_p0  ;;  %p2445_p11 = por %p160_p8, %p41_p3 }
   0xf   : > { %s2086_s8 = sshll.u32 %s2304_s21, 9  ;;  %s2065_s9 = sshll.u32 %s189_s7, 5 }
  0x10   : > { %s3006_s30 = scalar_select %p2441_p10, 1, 0 }
  0x11   : > { %s3007_s6 = scalar_select %p2445_p11, 1, 0 }
  0x12   : > { %s2454_s12 = scalar_lea.hbm %s2997_s0, %s2086_s8  ;;  %s193_s13 = scalar_lea.vmem [#allocation2], %s2065_s9 }
  0x13   : > { %s200_s14 = sshll.u32 %s193_s13, 4  ;;  %p2458_p12 = pnand %p2107_p9, %p2431_p5  ;;  %s2462_s14 = int_to_ptr.vmem [resolvable:$true] %s200_s14 }
  0x14   : > { %s2464_s16 = scalar_lea.sflag [#allocation3], %s189_s7  ;;  %s2208_s17 = scalar_lea.hbm %s2454_s12, 512 }
  0x15   : > { %p2209_p13 = scmp.ne.s32.totalorder %s2454_s12, %s2208_s17  ;;  %p2210_p0 = pneg %p2458_p12 }
  0x16   : > { %s2213_s26 = scalar_lea.hbm %s2997_s0, 2560  ;;  %p2214_p3 = scmp.lt.u32.totalorder %s2454_s12, %s2997_s0 }
  0x17   : > { %p2211_p1 = pnand %p2210_p0, %p2209_p13  ;;  %p2215_p4 = scmp.lt.u32.totalorder %s2213_s26, %s2208_s17 }
  0x18   : > { %p2217_p7 = scmp.lt.u32.totalorder %s2208_s17, %s2454_s12 }
  0x19   : > { %p2212_p2 = pneg %p2211_p1  ;;  %p2216_p5 = por %p2215_p4, %p2214_p3 }
  0x1b   : > { %p2218_p8 = por %p2217_p7, %p2216_p5 }
  0x1d   : > { %p2219_p9 = pnand %p2218_p8, %p2212_p2 }
  0x1f   : > { %2222 = shalt.err (!%p2219_p9)
}
  0x20   : > { %s2223_s7 = scalar_lea.vmem %s2462_s14, 512  ;;  %s2306_s9 = smov [#allocation2]  }
  0x21   : > { %p2224_p13 = scmp.ne.s32.totalorder %s2462_s14, %s2223_s7  ;;  %s2228_s10 = sshll.u32 %s2306_s9, 4  ;;  %s2229_s10 = int_to_ptr.vmem [resolvable:$false] %s2228_s10 }
  0x22   : > { %s2230_s11 = scalar_lea.vmem %s2229_s10, 1024  ;;  %p2231_p10 = scmp.lt.s32.totalorder %s2462_s14, %s2229_s10 }
  0x23   : > { %p2226_p1 = pnand %p2224_p13, %p2210_p0  ;;  %p2232_p3 = scmp.lt.s32.totalorder %s2230_s11, %s2223_s7 }
  0x25   : > { %p2227_p11 = pneg %p2226_p1  ;;  %p2233_p4 = por %p2232_p3, %p2231_p10 }
  0x27   : > { %p2234_p5 = pnand %p2233_p4, %p2227_p11 }
  0x29   : > { %2237 = shalt.err (!%p2234_p5)
}
  0x2a   : > { %s2307_s13 = smov 256   ;;  %s2308_s17 = smov 16  }
  0x2b   : > { %2102 = dma.hbm_to_vmem [thread:$0]  (!%p2458_p12), %s2454_s12, 512, %s2462_s14, %s2464_s16, %s2307_s13, %s2307_s13, %s2308_s17  }
  0x2c   : > { %p2068_p0 = scmp.ge.s32.totalorder %s2304_s21, 1  ;;  %p216_p2 = scmp.lt.s32.totalorder %s2304_s21, 6 }
  0x2e   : > { %p217_p7 = pnand %p2068_p0, %p216_p2 }
  0x2f   : > { %s2495_s23 = sand.u32 (!%p217_p7), 1, %s2296_s19  }
  0x30   : > { %220 = sbr.rel (%p217_p7) target bundleno = 781 (0x30d), region = 40  ;;  %s2069_s25 = sshll.u32 (!%p217_p7), %s2495_s23, 5 }
  0x31   : > { %s223_s26 = scalar_lea.sflag (!%p217_p7), [#allocation3], %s2495_s23  ;;  %s226_s28 = scalar_lea.vmem (!%p217_p7), [#allocation2], %s2069_s25 }
  0x37   : > { %2283 = dma.done.wait (%p2435_p6), %s223_s26, 512  }
  0x38   : > { %2285 = vsyncadd (%p2435_p6), %s223_s26, 4294966784  ;;  %p258_p10 = scmp.lt.s32.totalorder %s2413_s22, 4  ;;  %v2309_v0 = vmov 0   ;;  %v2310_v3 = vmov 0.0   ;;  %v263_v4 = vld [vmem:[%s226_s28] sm:$0xff]  ;;  %v265_v5 = vld [vmem:[%s226_s28 + $0x10] sm:$0xff] }
  0x39   : > { %2195 = vset.pattern.permute.xlu0 %v2309_v0  ;;  %418 = vmatprep.mubr.f32.mxu0 %v2310_v3  ;;  %v264_v6 = vld [vmem:[%s226_s28 + $0x8] sm:$0xff]  ;;  %v266_v7 = vld [vmem:[%s226_s28 + $0x18] sm:$0xff]  ;;  %v269_v8 = vmul.f32 %v263_v4, %v263_v4  ;;  %v271_v9 = vmul.f32 %v265_v5, %v265_v5  ;;  %v325_v52 = vld [vmem:[%s2999_s2] sm:$0xff]  ;;  %vm332_vm4 = vcmask 130048   ;;  %s2311_s17 = smov 111   ;;  %s2312_s26 = smov 51  }
  0x3a   : > { %s259_s12 = scalar_select %p258_p10, %s2413_s22, 4  ;;  %442 = vmatprep.mubr.f32.mxu1 %v2310_v3  ;;  %v270_v10 = vmul.f32 %v264_v6, %v264_v6  ;;  %v272_v11 = vmul.f32 %v266_v7, %v266_v7  ;;  %v329_v53 = vld [vmem:[%s2999_s2 + $0x20] sm:$0xff]  ;;  %v326_v54 = vld [vmem:[%s2999_s2 + $0x8] sm:$0xff]  ;;  %v327_v56 = vld [vmem:[%s2999_s2 + $0x10] sm:$0xff] }
  0x3b   : > { %v273_v12 = vadd.f32 %v271_v9, %v269_v8  ;;  %v330_v55 = vld [vmem:[%s2999_s2 + $0x28] sm:$0xff]  ;;  %v331_v57 = vld [vmem:[%s2999_s2 + $0x30] sm:$0x1]  ;;  %v328_v58 = vld [vmem:[%s2999_s2 + $0x18] sm:$0xff]  ;;  %s2314_s15 = smov 49   ;;  %s2315_s16 = smov 48  }
  0x3c   : > { %s2087_s14 = sshll.u32 %s259_s12, 4  ;;  %v280_v13 = vadd.f32 %v272_v11, %v270_v10  ;;  %v461_v59 = vld [vmem:[%s3000_s3] sm:$0xff]  ;;  %s2316_s10 = smov 47  }
  0x3d   : > { %s262_s8 = scalar_lea.vmem %s2998_s1, %s2087_s14  ;;  %v274_v14 = vrot.slane %v273_v12, 4  ;;  %v469_v60 = vld [vmem:[%s3000_s3 + $0x40] sm:$0xff]  ;;  %s2313_s14 = smov 50  }
  0x3e   : > { %v267_v1 = vld [vmem:[%s262_s8] sm:$0xff]  ;;  %v268_v2 = vld [vmem:[%s262_s8 + $0x8] sm:$0xff]  ;;  %v281_v15 = vrot.slane %v280_v13, 4  ;;  %s2317_s11 = smov 46   ;;  %s2318_s13 = smov 45  }
  0x3f   : > { %313 = vperm.xlu0 %2195, %v267_v1   ;;  %v275_v16 = vadd.f32 %v274_v14, %v273_v12  ;;  %s2321_s28 = smov 109   ;;  %s2322_s12 = smov 99  }
  0x40   : > { %v282_v17 = vadd.f32 %v281_v15, %v280_v13  ;;  %s2326_s7 = smov 95   ;;  %s2327_s9 = smov 34  }
  0x41   : > { %v276_v18 = vrot.slane %v275_v16, 2  ;;  %s2334_s8 = smov 18   ;;  %s2335_s29 = smov 17  }
  0x42   : > { %v283_v19 = vrot.slane %v282_v17, 2  ;;  %p3010_p11 = scmp.ne.s32.totalorder %s3006_s30, 0 }
  0x43   : > { %318 = vperm.xlu0 %2195, %v268_v2   ;;  %v277_v20 = vadd.f32 %v276_v18, %v275_v16 }
  0x44   : > { %v284_v21 = vadd.f32 %v283_v19, %v282_v17  ;;  %v468_v17 = vld [vmem:[%s3000_s3 + $0x38] sm:$0xff] }
  0x45   : > { %v278_v22 = vrot.slane %v277_v20, 1 }
  0x46   : > { %v285_v23 = vrot.slane %v284_v21, 1 }
  0x47   : > { %v279_v24 = vadd.f32 %v278_v22, %v277_v20  ;;  %v467_v20 = vld [vmem:[%s3000_s3 + $0x30] sm:$0xff] }
  0x48   : > { %v286_v25 = vadd.f32 %v285_v23, %v284_v21 }
  0x49   : > { %v287_v26 = vadd.f32 1e-06, %v279_v24 }
  0x4a   : > { %v288_v27 = vadd.f32 1e-06, %v286_v25 }
  0x4b   : > { %2196 = vrsqrt.f32 %v287_v26  ;;  %vm291_vm0 = vcmp.eq.f32.partialorder %v287_v26, inf  ;;  %v294_v32 = vand.u32 2147483648, %v287_v26  ;;  %vm293_vm2 = vcmp.eq.f32.partialorder %v287_v26, 0.0 }
  0x4c   : > { %2198 = vrsqrt.f32 %v288_v27  ;;  %vm298_vm1 = vcmp.eq.f32.partialorder %v288_v27, inf  ;;  %v301_v34 = vand.u32 2147483648, %v288_v27  ;;  %vm300_vm3 = vcmp.eq.f32.partialorder %v288_v27, 0.0 }
  0x55   : > { %v2197_v28 = vpop.eup %2196 }
  0x56   : > { %v2199_v29 = vpop.eup %2198  ;;  %v290_v30 = vmul.f32 %v2197_v28, %v287_v26 }
  0x57   : > { %v297_v31 = vmul.f32 %v2199_v29, %v288_v27 }
  0x58   : > { %v292_v33 = vsel %vm291_vm0, %v287_v26, %v290_v30 }
  0x59   : > { %v299_v35 = vsel %vm298_vm1, %v288_v27, %v297_v31  ;;  %v295_v36 = vsel %vm293_vm2, %v294_v32, %v292_v33 }
  0x5a   : > { %v302_v37 = vsel %vm300_vm3, %v301_v34, %v299_v35  ;;  %2200 = vrcp.f32 %v295_v36 }
  0x5b   : > { %2202 = vrcp.f32 %v302_v37 }
  0x64   : > { %v2201_v38 = vpop.eup %2200 }
  0x65   : > { %v2203_v39 = vpop.eup %2202  ;;  %v2512_v41 = vmul.f32 %v2201_v38, %v263_v4  ;;  %v2516_v43 = vmul.f32 %v2201_v38, %v265_v5  ;;  %v470_v4 = vld [vmem:[%s3000_s3 + $0x48] sm:$0xff] }
  0x66   : > { %v2514_v42 = vmul.f32 %v2203_v39, %v264_v6  ;;  %v2518_v44 = vmul.f32 %v2203_v39, %v266_v7 }
  0xbe   : > { %v314_v40 = vpop.permute.xlu0 %313 }
  0xbf   : > { %v321_v46 = vmul.f32 %v314_v40, %v2512_v41  ;;  %v322_v47 = vmul.f32 %v314_v40, %v2514_v42 }
  0xc2   : > { %v319_v45 = vpop.permute.xlu0 %318 }
  0xc3   : > { %v323_v48 = vmul.f32 %v319_v45, %v2516_v43  ;;  %v324_v49 = vmul.f32 %v319_v45, %v2518_v44 }
  0xc5   : > { %v2089_v50 = vpack.c.bf16 %v324_v49, %v322_v47  ;;  %v2091_v51 = vpack.c.bf16 %v323_v48, %v321_v46  ;;  %v463_v48 = vld [vmem:[%s3000_s3 + $0x10] sm:$0xff] }
  0xc7   : > { %2090 = vmatprep.subr.bf16.mxu0 %v2089_v50  ;;  %2093 = vmatprep.subr.bf16.mxu1 %v2089_v50 }
  0xc8   : > { %2092 = vmatpush1.bf16.msra.mxu0 %v2091_v51  ;;  %2094 = vmatpush1.bf16.msra.mxu1 %v2091_v51 }
  0xcb   : > { %2073 = vmatmul.mubr.msk.f32.vlgmr.msra.gmra.mrb[0].mxu0 %vm332_vm4, %v325_v52  ;;  %2077 = vmatmul.mubr.msk.f32.vlgmr.msra.gmra.mrb[0].mxu1 %vm332_vm4, %v329_v53 }
  0xcc   : > { %424 = vmatprep.mubr.f32.mxu0 %v2310_v3  ;;  %448 = vmatprep.mubr.f32.mxu1 %v2310_v3 }
  0xcf   : > { %2074 = vmatmul.mubr.msk.f32.gmra.mrb[2].mxu0 %vm332_vm4, %v326_v54  ;;  %2078 = vmatmul.mubr.msk.f32.gmra.mrb[2].mxu1 %vm332_vm4, %v330_v55  ;;  %v464_v54 = vld [vmem:[%s3000_s3 + $0x18] sm:$0xff] }
  0xd0   : > { %430 = vmatprep.mubr.f32.mxu0 %v2310_v3  ;;  %454 = vmatprep.mubr.f32.mxu1 %v2310_v3 }
  0xd3   : > { %2075 = vmatmul.mubr.msk.f32.gmra.mrb[4].mxu0 %vm332_vm4, %v327_v56  ;;  %2079 = vmatmul.mubr.msk.f32.gmra.mrb[4].mxu1 %vm332_vm4, %v331_v57 }
  0xd4   : > { %436 = vmatprep.mubr.f32.mxu0 %v2310_v3  ;;  %v462_v3 = vld [vmem:[%s3000_s3 + $0x8] sm:$0xff] }
  0xd7   : > { %2076 = vmatmul.mubr.msk.f32.gmra.mrb[6].mxu0 %vm332_vm4, %v328_v58 }
 0x19e   : > { %v420_v61 = vpop.f32.mrb[0].mxu0  ;;  %v444_v62 = vpop.f32.mrb[0].mxu1 }
 0x19f   : > { %v475_v63 = vmul.f32 %v461_v59, %v420_v61  ;;  %v2563_v0 = vmul.f32 %v469_v60, %v444_v62  ;;  %v422_v1 = vpop.f32.mrb[1].mxu0  ;;  %v446_v2 = vpop.f32.mrb[1].mxu1 }
 0x1a0   : > { %v476_v6 = vmul.f32 %v462_v3, %v422_v1  ;;  %v2576_v9 = vmul.f32 %v470_v4, %v446_v2  ;;  %v465_v4 = vld [vmem:[%s3000_s3 + $0x20] sm:$0xff] }
 0x1a1   : > { %1435 = vrot.lane.b32.xlu0 %v2563_v0, %s2311_s17  ;;  %490 = vrot.lane.b32.xlu1 %v475_v63, %s2312_s26  ;;  %v520_v7 = vrot.slane %v475_v63, 1  ;;  %v550_v11 = vrot.slane %v475_v63, 2  ;;  %v580_v14 = vrot.slane %v475_v63, 3  ;;  %v610_v18 = vrot.slane %v475_v63, 4 }
 0x1a2   : > { %v2572_v5 = vpop.f32.mrb[2].mxu0  ;;  %v521_v15 = vrot.slane %v476_v6, 1  ;;  %v551_v19 = vrot.slane %v476_v6, 2  ;;  %v640_v22 = vrot.slane %v475_v63, 5  ;;  %v581_v23 = vrot.slane %v476_v6, 3  ;;  %v2595_v28 = vpop.f32.mrb[2].mxu1 }
 0x1a3   : > { %v2574_v8 = vpop.f32.mrb[3].mxu0  ;;  %v670_v26 = vrot.slane %v475_v63, 6  ;;  %v611_v27 = vrot.slane %v476_v6, 4  ;;  %v700_v29 = vrot.slane %v475_v63, 7  ;;  %v641_v30 = vrot.slane %v476_v6, 5  ;;  %v2598_v33 = vpop.f32.mrb[3].mxu1 }
 0x1a4   : > { %v1463_v31 = vrot.slane %v2563_v0, 1  ;;  %v671_v32 = vrot.slane %v476_v6, 6  ;;  %v1493_v34 = vrot.slane %v2563_v0, 2  ;;  %v701_v35 = vrot.slane %v476_v6, 7 }
 0x1a5   : > { %524 = vrot.lane.b32.xlu0 %v520_v7, %s2313_s14  ;;  %492 = vrot.lane.b32.xlu1 %v476_v6, %s2312_s26  ;;  %s2320_s26 = smov 110   ;;  %v1523_v36 = vrot.slane %v2563_v0, 3  ;;  %v1464_v37 = vrot.slane %v2576_v9, 1  ;;  %v1553_v38 = vrot.slane %v2563_v0, 4  ;;  %v1494_v39 = vrot.slane %v2576_v9, 2 }
 0x1a6   : > { %v2578_v10 = vpop.f32.mrb[4].mxu0  ;;  %v1583_v40 = vrot.slane %v2563_v0, 5  ;;  %v1524_v45 = vrot.slane %v2576_v9, 3  ;;  %v1613_v46 = vrot.slane %v2563_v0, 6  ;;  %v1554_v47 = vrot.slane %v2576_v9, 4  ;;  %v2619_v55 = vpop.f32.mrb[4].mxu1 }
 0x1a7   : > { %v2580_v12 = vpop.f32.mrb[5].mxu0  ;;  %v1643_v49 = vrot.slane %v2563_v0, 7  ;;  %v1584_v50 = vrot.slane %v2576_v9, 5  ;;  %v477_v51 = vmul.f32 %v463_v48, %v2572_v5  ;;  %v1614_v52 = vrot.slane %v2576_v9, 6  ;;  %v2622_v57 = vpop.f32.mrb[5].mxu1 }
 0x1a8   : > { %v1644_v56 = vrot.slane %v2576_v9, 7  ;;  %v478_v58 = vmul.f32 %v464_v54, %v2574_v8  ;;  %v479_v7 = vmul.f32 %v465_v4, %v2578_v10 }
 0x1a9   : > { %554 = vrot.lane.b32.xlu0 %v550_v11, %s2314_s15  ;;  %1437 = vrot.lane.b32.xlu1 %v2576_v9, %s2311_s17  ;;  %s2319_s17 = smov 35   ;;  %v758_v53 = vrot.slane %v477_v51, 1  ;;  %v788_v59 = vrot.slane %v477_v51, 2  ;;  %v818_v60 = vrot.slane %v477_v51, 3  ;;  %v848_v62 = vrot.slane %v477_v51, 4  ;;  %v466_v11 = vld [vmem:[%s3000_s3 + $0x28] sm:$0xff] }
 0x1aa   : > { %v438_v13 = vpop.f32.mrb[6].mxu0  ;;  %v759_v61 = vrot.slane %v478_v58, 1  ;;  %v789_v63 = vrot.slane %v478_v58, 2  ;;  %v878_v0 = vrot.slane %v477_v51, 5  ;;  %v819_v1 = vrot.slane %v478_v58, 3 }
 0x1ab   : > { %v440_v16 = vpop.f32.mrb[7].mxu0  ;;  %v2591_v24 = vmul.f32 %v467_v20, %v438_v13  ;;  %v908_v2 = vrot.slane %v477_v51, 6  ;;  %v849_v3 = vrot.slane %v478_v58, 4  ;;  %v938_v5 = vrot.slane %v477_v51, 7 }
 0x1ac   : > { %v2589_v21 = vmul.f32 %v468_v17, %v440_v16  ;;  %v879_v6 = vrot.slane %v478_v58, 5  ;;  %v909_v8 = vrot.slane %v478_v58, 6  ;;  %v996_v9 = vrot.slane %v479_v7, 1 }
 0x1ad   : > { %584 = vrot.lane.b32.xlu0 %v580_v14, %s2315_s16  ;;  %526 = vrot.lane.b32.xlu1 %v521_v15, %s2313_s14  ;;  %s2323_s14 = smov 98   ;;  %v939_v13 = vrot.slane %v478_v58, 7  ;;  %v2634_v14 = vmul.f32 %v466_v11, %v2580_v12  ;;  %v1026_v15 = vrot.slane %v479_v7, 2  ;;  %v1056_v10 = vrot.slane %v479_v7, 3 }
 0x1ae   : > { %v1208_v25 = vcombine.low %v2591_v24, %v2589_v21  ;;  %v1086_v17 = vrot.slane %v479_v7, 4  ;;  %v494_v12 = vlaneseq }
 0x1af   : > { %v997_v16 = vrot.slane %v2634_v14, 1  ;;  %v1057_v20 = vrot.slane %v2634_v14, 3 }
 0x1b1   : > { %614 = vrot.lane.b32.xlu0 %v610_v18, %s2316_s10  ;;  %556 = vrot.lane.b32.xlu1 %v551_v19, %s2314_s15  ;;  %s2324_s15 = smov 97   ;;  %v1027_v18 = vrot.slane %v2634_v14, 2  ;;  %v1116_v19 = vrot.slane %v479_v7, 5 }
 0x1b5   : > { %644 = vrot.lane.b32.xlu0 %v640_v22, %s2317_s11  ;;  %586 = vrot.lane.b32.xlu1 %v581_v23, %s2315_s16  ;;  %s2325_s16 = smov 96   ;;  %v2641_v22 = vand.u32 127, %v494_v12  ;;  %v2341_v23 = vmov 1966171168  }
 0x1b7   : > { %vm496_vm5 = vcmp.lt.s32.totalorder %v2641_v22, 51  ;;  %vm1439_vm6 = vcmp.lt.s32.totalorder %v2641_v22, 111  ;;  %vm528_vm7 = vcmp.lt.s32.totalorder %v2641_v22, 50  ;;  %vm558_vm8 = vcmp.lt.s32.totalorder %v2641_v22, 49 }
 0x1b8   : > { %vm588_vm9 = vcmp.lt.s32.totalorder %v2641_v22, 48  ;;  %vm618_vm10 = vcmp.lt.s32.totalorder %v2641_v22, 47  ;;  %vm648_vm11 = vcmp.lt.s32.totalorder %v2641_v22, 46  ;;  %vm678_vm12 = vcmp.lt.s32.totalorder %v2641_v22, 45 }
 0x1b9   : > { %674 = vrot.lane.b32.xlu0 %v670_v26, %s2318_s13  ;;  %616 = vrot.lane.b32.xlu1 %v611_v27, %s2316_s10  ;;  %s2336_s10 = smov 16   ;;  %v503_v26 = vunpack.c.l.s4 %v2341_v23  ;;  %vm708_vm13 = vcmp.lt.s32.totalorder %v2641_v22, 35  ;;  %vm1471_vm14 = vcmp.lt.s32.totalorder %v2641_v22, 110  ;;  %vm1501_vm15 = vcmp.lt.s32.totalorder %v2641_v22, 109 }
 0x1ba   : > { %vm1531_vm0 = vcmp.lt.s32.totalorder %v2641_v22, 99  ;;  %vm1561_vm1 = vcmp.lt.s32.totalorder %v2641_v22, 98  ;;  %vm1591_vm2 = vcmp.lt.s32.totalorder %v2641_v22, 97  ;;  %vm1621_vm3 = vcmp.lt.s32.totalorder %v2641_v22, 96 }
 0x1bb   : > { %vm1651_vm4 = vcmp.lt.s32.totalorder %v2641_v22, 95 }
 0x1bd   : > { %704 = vrot.lane.b32.xlu0 %v700_v29, %s2319_s17  ;;  %646 = vrot.lane.b32.xlu1 %v641_v30, %s2317_s11  ;;  %s2337_s11 = smov 15   ;;  %v1146_v30 = vrot.slane %v479_v7, 6 }
 0x1c1   : > { %1467 = vrot.lane.b32.xlu0 %v1463_v31, %s2320_s26  ;;  %676 = vrot.lane.b32.xlu1 %v671_v32, %s2318_s13  ;;  %s2328_s13 = smov 33   ;;  %v1087_v31 = vrot.slane %v2634_v14, 4  ;;  %v504_v32 = vunpack.c.0.s8 %v503_v26 }
 0x1c5   : > { %1497 = vrot.lane.b32.xlu0 %v1493_v34, %s2321_s28  ;;  %706 = vrot.lane.b32.xlu1 %v701_v35, %s2319_s17  ;;  %s2329_s17 = smov 32   ;;  %v2645_v34 = vshrl.u32 %v494_v12, 7 }
 0x1c9   : > { %1527 = vrot.lane.b32.xlu0 %v1523_v36, %s2322_s12  ;;  %1469 = vrot.lane.b32.xlu1 %v1464_v37, %s2320_s26  ;;  %s2330_s26 = smov 31   ;;  %v1176_v37 = vrot.slane %v479_v7, 7 }
 0x1cd   : > { %1557 = vrot.lane.b32.xlu0 %v1553_v38, %s2323_s14  ;;  %1499 = vrot.lane.b32.xlu1 %v1494_v39, %s2321_s28  ;;  %s2331_s28 = smov 30   ;;  %v1117_v38 = vrot.slane %v2634_v14, 5 }
 0x1d1   : > { %1587 = vrot.lane.b32.xlu0 %v1583_v40, %s2324_s15  ;;  %1529 = vrot.lane.b32.xlu1 %v1524_v45, %s2322_s12  ;;  %s2332_s12 = smov 29   ;;  %v2649_v45 = vsub.s32 %v504_v32, %v2645_v34  ;;  %v1286_v32 = vrot.slane %v2589_v21, 3 }
 0x1d5   : > { %1617 = vrot.lane.b32.xlu0 %v1613_v46, %s2325_s16  ;;  %1559 = vrot.lane.b32.xlu1 %v1554_v47, %s2323_s14  ;;  %s2333_s14 = smov 19   ;;  %v1225_v47 = vrot.slane %v2591_v24, 1 }
 0x1d9   : > { %1647 = vrot.lane.b32.xlu0 %v1643_v49, %s2326_s7  ;;  %1589 = vrot.lane.b32.xlu1 %v1584_v50, %s2324_s15  ;;  %v1147_v50 = vrot.slane %v2634_v14, 6  ;;  %s2345_s15 = smov 126  }
 0x1dd   : > { %1619 = vrot.lane.b32.xlu1 %v1614_v52, %s2325_s16  ;;  %730 = vrot.lane.b32.xlu0 %v477_v51, %s2327_s9  ;;  %s2353_s16 = smov 83  }
 0x1e1   : > { %1649 = vrot.lane.b32.xlu1 %v1644_v56, %s2326_s7  ;;  %762 = vrot.lane.b32.xlu0 %v758_v53, %s2328_s13  ;;  %v1255_v56 = vrot.slane %v2591_v24, 2  ;;  %s2347_s7 = smov 115  }
 0x1e5   : > { %792 = vrot.lane.b32.xlu0 %v788_v59, %s2329_s17  ;;  %732 = vrot.lane.b32.xlu1 %v478_v58, %s2327_s9  ;;  %s2348_s9 = smov 114  }
 0x1e9   : > { %822 = vrot.lane.b32.xlu0 %v818_v60, %s2330_s26  ;;  %764 = vrot.lane.b32.xlu1 %v759_v61, %s2328_s13  ;;  %s2338_s13 = smov 14   ;;  %v1177_v60 = vrot.slane %v2634_v14, 7 }
 0x1ed   : > { %852 = vrot.lane.b32.xlu0 %v848_v62, %s2331_s28  ;;  %794 = vrot.lane.b32.xlu1 %v789_v63, %s2329_s17  ;;  %s2339_s17 = smov 13  }
 0x1f1   : > { %882 = vrot.lane.b32.xlu0 %v878_v0, %s2332_s12  ;;  %824 = vrot.lane.b32.xlu1 %v819_v1, %s2330_s26  ;;  %s2340_s26 = smov 3   ;;  %v1285_v1 = vrot.slane %v2591_v24, 3 }
 0x1f5   : > { %912 = vrot.lane.b32.xlu0 %v908_v2, %s2333_s14  ;;  %854 = vrot.lane.b32.xlu1 %v849_v3, %s2331_s28  ;;  %s2342_s28 = smov 2   ;;  %v1226_v2 = vrot.slane %v2589_v21, 1  ;;  %v489_v3 = vld [vmem:[%s3001_s4] sm:$0x3] }
 0x1f9   : > { %942 = vrot.lane.b32.xlu0 %v938_v5, %s2334_s8  ;;  %884 = vrot.lane.b32.xlu1 %v879_v6, %s2332_s12  ;;  %s2343_s12 = smov 1  }
 0x1fd   : > { %914 = vrot.lane.b32.xlu1 %v909_v8, %s2333_s14  ;;  %968 = vrot.lane.b32.xlu0 %v479_v7, %s2335_s29  ;;  %s2344_s14 = smov 127  }
 0x201   : > { %944 = vrot.lane.b32.xlu1 %v939_v13, %s2334_s8  ;;  %1000 = vrot.lane.b32.xlu0 %v996_v9, %s2336_s10  ;;  %s2354_s8 = smov 82  }
 0x205   : > { %1030 = vrot.lane.b32.xlu0 %v1026_v15, %s2337_s11  ;;  %970 = vrot.lane.b32.xlu1 %v2634_v14, %s2335_s29  ;;  %s2346_s29 = smov 125  }
 0x209   : > { %1060 = vrot.lane.b32.xlu0 %v1056_v10, %s2338_s13  ;;  %1002 = vrot.lane.b32.xlu1 %v997_v16, %s2336_s10 }
 0x20d   : > { %1090 = vrot.lane.b32.xlu0 %v1086_v17, %s2339_s17  ;;  %1032 = vrot.lane.b32.xlu1 %v1027_v18, %s2337_s11  ;;  %v1315_v17 = vrot.slane %v2591_v24, 4  ;;  %v1256_v18 = vrot.slane %v2589_v21, 2  ;;  %s2349_s11 = smov 113  }
 0x211   : > { %1120 = vrot.lane.b32.xlu0 %v1116_v19, %s2340_s26  ;;  %1062 = vrot.lane.b32.xlu1 %v1057_v20, %s2338_s13 }
 0x213   : > { %v1436_v27 = vpop.permute.xlu0 %1435  ;;  %v491_v29 = vpop.permute.xlu1 %490 }
 0x215   : > { %1150 = vrot.lane.b32.xlu0 %v1146_v30, %s2342_s28  ;;  %1092 = vrot.lane.b32.xlu1 %v1087_v31, %s2339_s17  ;;  %v1345_v31 = vrot.slane %v2591_v24, 5  ;;  %s2358_s17 = smov 78  }
 0x217   : > { %v525_v35 = vpop.permute.xlu0 %524  ;;  %v493_v36 = vpop.permute.xlu1 %492 }
 0x218   : > { %v497_v39 = vsel %vm496_vm5, %v491_v29, %v493_v36  ;;  %v498_v40 = vsel %vm496_vm5, %v493_v36, %v491_v29  ;;  %vm734_vm5 = vcmp.lt.s32.totalorder %v2641_v22, 34 }
 0x219   : > { %v501_v46 = vcombine.low %v498_v40, %v497_v39  ;;  %1180 = vrot.lane.b32.xlu0 %v1176_v37, %s2343_s12  ;;  %1122 = vrot.lane.b32.xlu1 %v1117_v38, %s2340_s26  ;;  %s2350_s26 = smov 112  }
 0x21b   : > { %v555_v48 = vpop.permute.xlu0 %554  ;;  %v1438_v49 = vpop.permute.xlu1 %1437  ;;  %v508_v53 = vrot.slane %v501_v46, %v2649_v45 }
 0x21c   : > { %v2654_v51 = vsel %vm1439_vm6, %v1436_v27, %v1438_v49  ;;  %v2656_v52 = vsel %vm1439_vm6, %v1438_v49, %v1436_v27  ;;  %v1316_v49 = vrot.slane %v2589_v21, 4  ;;  %vm766_vm6 = vcmp.lt.s32.totalorder %v2641_v22, 33 }
 0x21d   : > { %v1444_v54 = vcombine.low %v2654_v51, %v2656_v52  ;;  %1152 = vrot.lane.b32.xlu1 %v1147_v50, %s2342_s28  ;;  %1229 = vrot.lane.b32.xlu0 %v1225_v47, %s2344_s14  ;;  %v515_v63 = vrot.slane %v508_v53, %v2649_v45  ;;  %s2351_s28 = smov 94  }
 0x21f   : > { %v585_v58 = vpop.permute.xlu0 %584  ;;  %v527_v59 = vpop.permute.xlu1 %526  ;;  %v517_v9 = vadd.f32 %v515_v63, %v489_v3 }
 0x220   : > { %v529_v61 = vsel %vm528_vm7, %v525_v35, %v527_v59  ;;  %v530_v62 = vsel %vm528_vm7, %v527_v59, %v525_v35  ;;  %v471_v59 = vld [vmem:[%s3000_s3 + $0x50] sm:$0xff]  ;;  %vm796_vm7 = vcmp.lt.s32.totalorder %v2641_v22, 32 }
 0x221   : > { %v533_v0 = vcombine.low %v530_v62, %v529_v61  ;;  %1182 = vrot.lane.b32.xlu1 %v1177_v60, %s2343_s12  ;;  %1259 = vrot.lane.b32.xlu0 %v1255_v56, %s2345_s15 }
 0x223   : > { %v540_v4 = vrot.slane %v533_v0, %v2649_v45  ;;  %v615_v5 = vpop.permute.xlu0 %614  ;;  %v557_v6 = vpop.permute.xlu1 %556  ;;  %v1405_v0 = vrot.slane %v2591_v24, 7 }
 0x224   : > { %v559_v7 = vsel %vm558_vm8, %v555_v48, %v557_v6  ;;  %v560_v8 = vsel %vm558_vm8, %v557_v6, %v555_v48  ;;  %v1375_v48 = vrot.slane %v2591_v24, 6  ;;  %v2705_v6 = vmul.f32 %v471_v59, %v2595_v28  ;;  %v472_v28 = vld [vmem:[%s3000_s3 + $0x58] sm:$0xff] }
 0x225   : > { %v547_v11 = vrot.slane %v540_v4, %v2649_v45  ;;  %v563_v13 = vcombine.low %v560_v8, %v559_v7  ;;  %1289 = vrot.lane.b32.xlu0 %v1285_v1, %s2346_s29  ;;  %1231 = vrot.lane.b32.xlu1 %v1226_v2, %s2344_s14  ;;  %v1346_v1 = vrot.slane %v2589_v21, 5  ;;  %vm826_vm8 = vcmp.lt.s32.totalorder %v2641_v22, 31  ;;  %s2088_s14 = sshll.u32 %s2413_s22, 9  ;;  %s1964_s22 = scalar_lea.sflag [#allocation4], %s2495_s23 }
 0x226   : > { %v1791_v59 = vrot.slane %v2705_v6, 4 }
 0x227   : > { %v549_v14 = vadd.f32 %v547_v11, %v517_v9  ;;  %v570_v15 = vrot.slane %v563_v13, %v2649_v45  ;;  %v645_v10 = vpop.permute.xlu0 %644  ;;  %v587_v16 = vpop.permute.xlu1 %586  ;;  %v1376_v13 = vrot.slane %v2589_v21, 6 }
 0x228   : > { %v589_v12 = vsel %vm588_vm9, %v585_v58, %v587_v16  ;;  %v590_v19 = vsel %vm588_vm9, %v587_v16, %v585_v58  ;;  %vm856_vm9 = vcmp.lt.s32.totalorder %v2641_v22, 30 }
 0x229   : > { %v577_v20 = vrot.slane %v570_v15, %v2649_v45  ;;  %v593_v23 = vcombine.low %v590_v19, %v589_v12  ;;  %1319 = vrot.lane.b32.xlu0 %v1315_v17, %s2347_s7  ;;  %1261 = vrot.lane.b32.xlu1 %v1256_v18, %s2345_s15  ;;  %v1701_v17 = vrot.slane %v2705_v6, 1  ;;  %s2352_s15 = smov 93  }
 0x22b   : > { %v579_v26 = vadd.f32 %v577_v20, %v549_v14  ;;  %v600_v27 = vrot.slane %v593_v23, %v2649_v45  ;;  %v675_v29 = vpop.permute.xlu0 %674  ;;  %v617_v30 = vpop.permute.xlu1 %616  ;;  %v1406_v23 = vrot.slane %v2589_v21, 7 }
 0x22c   : > { %v619_v35 = vsel %vm618_vm10, %v615_v5, %v617_v30  ;;  %v620_v36 = vsel %vm618_vm10, %v617_v30, %v615_v5  ;;  %vm886_vm10 = vcmp.lt.s32.totalorder %v2641_v22, 29 }
 0x22d   : > { %v607_v37 = vrot.slane %v600_v27, %v2649_v45  ;;  %v623_v38 = vcombine.low %v620_v36, %v619_v35  ;;  %1349 = vrot.lane.b32.xlu0 %v1345_v31, %s2348_s9  ;;  %1291 = vrot.lane.b32.xlu1 %v1286_v32, %s2346_s29  ;;  %v1731_v32 = vrot.slane %v2705_v6, 2  ;;  %s2355_s29 = smov 81  }
 0x22f   : > { %v609_v39 = vadd.f32 %v607_v37, %v579_v26  ;;  %v630_v40 = vrot.slane %v623_v38, %v2649_v45  ;;  %v705_v46 = vpop.permute.xlu0 %704  ;;  %v647_v47 = vpop.permute.xlu1 %646 }
 0x230   : > { %v649_v50 = vsel %vm648_vm11, %v645_v10, %v647_v47  ;;  %v650_v53 = vsel %vm648_vm11, %v647_v47, %v645_v10  ;;  %v1761_v47 = vrot.slane %v2705_v6, 3  ;;  %vm916_vm11 = vcmp.lt.s32.totalorder %v2641_v22, 19 }
 0x231   : > { %v637_v56 = vrot.slane %v630_v40, %v2649_v45  ;;  %v653_v58 = vcombine.low %v650_v53, %v649_v50  ;;  %1379 = vrot.lane.b32.xlu0 %v1375_v48, %s2349_s11  ;;  %1321 = vrot.lane.b32.xlu1 %v1316_v49, %s2347_s7  ;;  %s2356_s7 = smov 80  }
 0x233   : > { %v639_v60 = vadd.f32 %v637_v56, %v609_v39  ;;  %v660_v61 = vrot.slane %v653_v58, %v2649_v45  ;;  %v1468_v62 = vpop.permute.xlu0 %1467  ;;  %v677_v63 = vpop.permute.xlu1 %676 }
 0x234   : > { %v679_v2 = vsel %vm678_vm12, %v675_v29, %v677_v63  ;;  %v680_v3 = vsel %vm678_vm12, %v677_v63, %v675_v29  ;;  %v2725_v29 = vmul.f32 %v472_v28, %v2598_v33  ;;  %vm946_vm12 = vcmp.lt.s32.totalorder %v2641_v22, 18 }
 0x235   : > { %v667_v4 = vrot.slane %v660_v61, %v2649_v45  ;;  %v683_v5 = vcombine.low %v680_v3, %v679_v2  ;;  %1409 = vrot.lane.b32.xlu0 %v1405_v0, %s2350_s26  ;;  %1351 = vrot.lane.b32.xlu1 %v1346_v1, %s2348_s9  ;;  %v1821_v2 = vrot.slane %v2705_v6, 5  ;;  %s2357_s9 = smov 79  }
 0x236   : > { %v1702_v48 = vrot.slane %v2725_v29, 1  ;;  %v1762_v3 = vrot.slane %v2725_v29, 3 }
 0x237   : > { %v669_v7 = vadd.f32 %v667_v4, %v639_v60  ;;  %v690_v8 = vrot.slane %v683_v5, %v2649_v45  ;;  %v1498_v9 = vpop.permute.xlu0 %1497  ;;  %v707_v11 = vpop.permute.xlu1 %706  ;;  %v1732_v60 = vrot.slane %v2725_v29, 2 }
 0x238   : > { %v709_v14 = vsel %vm708_vm13, %v705_v46, %v707_v11  ;;  %v710_v15 = vsel %vm708_vm13, %v707_v11, %v705_v46  ;;  %v1851_v11 = vrot.slane %v2705_v6, 6  ;;  %vm972_vm13 = vcmp.lt.s32.totalorder %v2641_v22, 17 }
 0x239   : > { %v697_v10 = vrot.slane %v690_v8, %v2649_v45  ;;  %v713_v16 = vcombine.low %v710_v15, %v709_v14  ;;  %1673 = vrot.lane.b32.xlu0 %v2705_v6, %s2351_s28  ;;  %1381 = vrot.lane.b32.xlu1 %v1376_v13, %s2349_s11  ;;  %v1792_v13 = vrot.slane %v2725_v29, 4 }
 0x23b   : > { %v699_v18 = vadd.f32 %v697_v10, %v669_v7  ;;  %v720_v12 = vrot.slane %v713_v16, %v2649_v45  ;;  %v1528_v19 = vpop.permute.xlu0 %1527  ;;  %v1470_v20 = vpop.permute.xlu1 %1469  ;;  %v473_v16 = vld [vmem:[%s3000_s3 + $0x60] sm:$0x1] }
 0x23c   : > { %v2720_v26 = vsel %vm1471_vm14, %v1468_v62, %v1470_v20  ;;  %v2722_v27 = vsel %vm1471_vm14, %v1470_v20, %v1468_v62  ;;  %vm1004_vm14 = vcmp.lt.s32.totalorder %v2641_v22, 16 }
 0x23d   : > { %v727_v30 = vrot.slane %v720_v12, %v2649_v45  ;;  %v1476_v31 = vcombine.low %v2720_v26, %v2722_v27  ;;  %1705 = vrot.lane.b32.xlu0 %v1701_v17, %s2352_s15  ;;  %1411 = vrot.lane.b32.xlu1 %v1406_v23, %s2350_s26  ;;  %v1822_v12 = vrot.slane %v2725_v29, 5  ;;  %s2359_s26 = smov 77  }
 0x23f   : > { %v2733_v35 = vadd.f32 %v727_v30, %v699_v18  ;;  %v1558_v36 = vpop.permute.xlu0 %1557  ;;  %v1500_v37 = vpop.permute.xlu1 %1499  ;;  %v1881_v18 = vrot.slane %v2705_v6, 7  ;;  %v487_v30 = vmul.f32 %v473_v16, %v2619_v55  ;;  %v474_v6 = vld [vmem:[%s3000_s3 + $0x68] sm:$0x1] }
 0x240   : > { %v2735_v38 = vsel %vm1501_vm15, %v1498_v9, %v1500_v37  ;;  %v2737_v33 = vsel %vm1501_vm15, %v1500_v37, %v1498_v9  ;;  %v1852_v37 = vrot.slane %v2725_v29, 6  ;;  %vm1034_vm15 = vcmp.lt.s32.totalorder %v2641_v22, 15 }
 0x241   : > { %v1506_v39 = vcombine.low %v2735_v38, %v2737_v33  ;;  %1735 = vrot.lane.b32.xlu0 %v1731_v32, %s2353_s16  ;;  %1675 = vrot.lane.b32.xlu1 %v2725_v29, %s2351_s28 }
 0x243   : > { %v1588_v40 = vpop.permute.xlu0 %1587  ;;  %v1530_v46 = vpop.permute.xlu1 %1529  ;;  %v1513_v51 = vrot.slane %v1506_v39, %v2649_v45 }
 0x244   : > { %v2745_v49 = vsel %vm1531_vm0, %v1528_v19, %v1530_v46  ;;  %v2747_v50 = vsel %vm1531_vm0, %v1530_v46, %v1528_v19  ;;  %vm1064_vm0 = vcmp.lt.s32.totalorder %v2641_v22, 14 }
 0x245   : > { %v1536_v53 = vcombine.low %v2745_v49, %v2747_v50  ;;  %1765 = vrot.lane.b32.xlu0 %v1761_v47, %s2354_s8  ;;  %1707 = vrot.lane.b32.xlu1 %v1702_v48, %s2352_s15  ;;  %v1882_v47 = vrot.slane %v2725_v29, 7  ;;  %v488_v48 = vmul.f32 %v474_v6, %v2622_v57  ;;  %s257_s15 = scalar_lea.vmem [#allocation5], %s2069_s25 }
 0x247   : > { %v1618_v56 = vpop.permute.xlu0 %1617  ;;  %v1560_v58 = vpop.permute.xlu1 %1559  ;;  %v1543_v26 = vrot.slane %v1536_v53, %v2649_v45 }
 0x248   : > { %v2754_v61 = vsel %vm1561_vm1, %v1558_v36, %v1560_v58  ;;  %v2756_v62 = vsel %vm1561_vm1, %v1560_v58, %v1558_v36  ;;  %vm1094_vm1 = vcmp.lt.s32.totalorder %v2641_v22, 13 }
 0x249   : > { %v1566_v63 = vcombine.low %v2754_v61, %v2756_v62  ;;  %1795 = vrot.lane.b32.xlu0 %v1791_v59, %s2355_s29  ;;  %1737 = vrot.lane.b32.xlu1 %v1732_v60, %s2353_s16  ;;  %v1550_v49 = vrot.slane %v1543_v26, %v2649_v45  ;;  %s1977_s16 = sshll.u32 %s257_s15, 4  ;;  %s2953_s16 = int_to_ptr.vmem [resolvable:$true] %s1977_s16 }
 0x24a   : > { %s2238_s25 = scalar_lea.vmem %s2953_s16, 512 }
 0x24b   : > { %v1648_v0 = vpop.permute.xlu0 %1647  ;;  %v1590_v1 = vpop.permute.xlu1 %1589  ;;  %v1573_v38 = vrot.slane %v1566_v63, %v2649_v45  ;;  %p2239_p6 = scmp.ne.s32.totalorder %s2953_s16, %s2238_s25 }
 0x24c   : > { %v2763_v4 = vsel %vm1591_vm2, %v1588_v40, %v1590_v1  ;;  %v2765_v5 = vsel %vm1591_vm2, %v1590_v1, %v1588_v40  ;;  %vm1124_vm2 = vcmp.lt.s32.totalorder %v2641_v22, 3 }
 0x24d   : > { %v1596_v7 = vcombine.low %v2763_v4, %v2765_v5  ;;  %1825 = vrot.lane.b32.xlu0 %v1821_v2, %s2356_s7  ;;  %1767 = vrot.lane.b32.xlu1 %v1762_v3, %s2354_s8  ;;  %v1580_v62 = vrot.slane %v1573_v38, %v2649_v45  ;;  %p2240_p12 = pnand %p2239_p6, %p3010_p11 }
 0x24f   : > { %v1620_v8 = vpop.permute.xlu1 %1619  ;;  %v731_v9 = vpop.permute.xlu0 %730  ;;  %v1603_v50 = vrot.slane %v1596_v7, %v2649_v45  ;;  %p2241_p8 = pneg %p2240_p12 }
 0x250   : > { %v2772_v14 = vsel %vm1621_vm3, %v1618_v56, %v1620_v8  ;;  %v2774_v15 = vsel %vm1621_vm3, %v1620_v8, %v1618_v56  ;;  %vm1154_vm3 = vcmp.lt.s32.totalorder %v2641_v22, 2 }
 0x251   : > { %v1626_v10 = vcombine.low %v2772_v14, %v2774_v15  ;;  %1855 = vrot.lane.b32.xlu0 %v1851_v11, %s2357_s9  ;;  %1797 = vrot.lane.b32.xlu1 %v1792_v13, %s2355_s29  ;;  %v1610_v5 = vrot.slane %v1603_v50, %v2649_v45 }
 0x253   : > { %v1650_v28 = vpop.permute.xlu1 %1649  ;;  %v763_v17 = vpop.permute.xlu0 %762  ;;  %v1633_v63 = vrot.slane %v1626_v10, %v2649_v45 }
 0x254   : > { %v2784_v19 = vsel %vm1651_vm4, %v1648_v0, %v1650_v28  ;;  %v2786_v20 = vsel %vm1651_vm4, %v1650_v28, %v1648_v0  ;;  %vm1184_vm4 = vcmp.lt.s32.totalorder %v2641_v22, 1 }
 0x255   : > { %1885 = vrot.lane.b32.xlu0 %v1881_v18, %s2358_s17  ;;  %1827 = vrot.lane.b32.xlu1 %v1822_v12, %s2356_s7  ;;  %v3009_v7 = vcombine.low %v2784_v19, %v2786_v20  ;;  %v1640_v15 = vrot.slane %v1633_v63, %v2649_v45  ;;  %s2947_s7 = scalar_lea.hbm %s3002_s5, %s2088_s14 }
 0x257   : > { %v793_v32 = vpop.permute.xlu0 %792  ;;  %v733_v36 = vpop.permute.xlu1 %732 }
 0x258   : > { %v735_v3 = vsel %vm734_vm5, %v731_v9, %v733_v36  ;;  %v736_v8 = vsel %vm734_vm5, %v733_v36, %v731_v9  ;;  %vm1233_vm5 = vcmp.lt.s32.totalorder %v2641_v22, 127 }
 0x259   : > { %1857 = vrot.lane.b32.xlu1 %v1852_v37, %s2357_s9  ;;  %1911 = vrot.lane.b32.xlu0 %v487_v30, %s2359_s26  ;;  %v739_v16 = vcombine.low %v736_v8, %v735_v3  ;;  %s2360_s9 = smov [#allocation5]  }
 0x25a   : > { %s2242_s11 = sshll.u32 %s2360_s9, 4  ;;  %s2243_s11 = int_to_ptr.vmem [resolvable:$false] %s2242_s11 }
 0x25b   : > { %v823_v40 = vpop.permute.xlu0 %822  ;;  %v765_v46 = vpop.permute.xlu1 %764  ;;  %v746_v9 = vrot.slane %v739_v16, %v2649_v45  ;;  %s2244_s13 = scalar_lea.vmem %s2243_s11, 1024  ;;  %p2245_p9 = scmp.lt.s32.totalorder %s2953_s16, %s2243_s11 }
 0x25c   : > { %v767_v11 = vsel %vm766_vm6, %v763_v17, %v765_v46  ;;  %v768_v13 = vsel %vm766_vm6, %v765_v46, %v763_v17  ;;  %vm1263_vm6 = vcmp.lt.s32.totalorder %v2641_v22, 126  ;;  %p2246_p13 = scmp.lt.s32.totalorder %s2244_s13, %s2238_s25 }
 0x25d   : > { %1887 = vrot.lane.b32.xlu1 %v1882_v47, %s2358_s17  ;;  %v771_v12 = vcombine.low %v768_v13, %v767_v11  ;;  %v753_v11 = vrot.slane %v746_v9, %v2649_v45 }
 0x25e   : > { %p2247_p1 = por %p2246_p13, %p2245_p9 }
 0x25f   : > { %v853_v56 = vpop.permute.xlu0 %852  ;;  %v795_v55 = vpop.permute.xlu1 %794  ;;  %v778_v17 = vrot.slane %v771_v12, %v2649_v45 }
 0x260   : > { %v797_v28 = vsel %vm796_vm7, %v793_v32, %v795_v55  ;;  %v798_v18 = vsel %vm796_vm7, %v795_v55, %v793_v32  ;;  %vm1293_vm7 = vcmp.lt.s32.totalorder %v2641_v22, 125  ;;  %p2248_p3 = pnand %p2247_p1, %p2241_p8 }
 0x261   : > { %1913 = vrot.lane.b32.xlu1 %v488_v48, %s2359_s26  ;;  %v801_v36 = vcombine.low %v798_v18, %v797_v28 }
 0x263   : > { %v883_v58 = vpop.permute.xlu0 %882  ;;  %v825_v59 = vpop.permute.xlu1 %824 }
 0x264   : > { %v827_v6 = vsel %vm826_vm8, %v823_v40, %v825_v59  ;;  %v828_v47 = vsel %vm826_vm8, %v825_v59, %v823_v40  ;;  %v808_v40 = vrot.slane %v801_v36, %v2649_v45  ;;  %vm1323_vm8 = vcmp.lt.s32.totalorder %v2641_v22, 115 }
 0x265   : > { %v831_v46 = vcombine.low %v828_v47, %v827_v6 }
 0x267   : > { %v913_v60 = vpop.permute.xlu0 %912  ;;  %v855_v0 = vpop.permute.xlu1 %854 }
 0x268   : > { %v857_v48 = vsel %vm856_vm9, %v853_v56, %v855_v0  ;;  %v858_v23 = vsel %vm856_vm9, %v855_v0, %v853_v56  ;;  %v785_v56 = vrot.slane %v778_v17, %v2649_v45  ;;  %v838_v0 = vrot.slane %v831_v46, %v2649_v45 }
 0x269   : > { %v861_v59 = vcombine.low %v858_v23, %v857_v48  ;;  %v815_v23 = vrot.slane %v808_v40, %v2649_v45  ;;  %vm1353_vm9 = vcmp.lt.s32.totalorder %v2641_v22, 114 }
 0x26a   : > { %v845_v48 = vrot.slane %v838_v0, %v2649_v45 }
 0x26b   : > { %v943_v1 = vpop.permute.xlu0 %942  ;;  %v885_v2 = vpop.permute.xlu1 %884  ;;  %v868_v47 = vrot.slane %v861_v59, %v2649_v45 }
 0x26c   : > { %v887_v3 = vsel %vm886_vm10, %v883_v58, %v885_v2  ;;  %v888_v8 = vsel %vm886_vm10, %v885_v2, %v883_v58  ;;  %v755_v2 = vadd.f32 %v753_v11, %v2733_v35  ;;  %vm1383_vm10 = vcmp.lt.s32.totalorder %v2641_v22, 113 }
 0x26d   : > { %v891_v28 = vcombine.low %v888_v8, %v887_v3  ;;  %v875_v11 = vrot.slane %v868_v47, %v2649_v45 }
 0x26e   : > { %v787_v36 = vadd.f32 %v785_v56, %v755_v2 }
 0x26f   : > { %v915_v29 = vpop.permute.xlu1 %914  ;;  %v969_v57 = vpop.permute.xlu0 %968  ;;  %v898_v17 = vrot.slane %v891_v28, %v2649_v45 }
 0x270   : > { %v917_v13 = vsel %vm916_vm11, %v913_v60, %v915_v29  ;;  %v918_v16 = vsel %vm916_vm11, %v915_v29, %v913_v60  ;;  %v817_v35 = vadd.f32 %v815_v23, %v787_v36  ;;  %vm1413_vm11 = vcmp.lt.s32.totalorder %v2641_v22, 112 }
 0x271   : > { %v921_v60 = vcombine.low %v918_v16, %v917_v13  ;;  %v905_v16 = vrot.slane %v898_v17, %v2649_v45 }
 0x272   : > { %v847_v13 = vadd.f32 %v845_v48, %v817_v35 }
 0x273   : > { %v945_v30 = vpop.permute.xlu1 %944  ;;  %v1001_v37 = vpop.permute.xlu0 %1000  ;;  %v928_v40 = vrot.slane %v921_v60, %v2649_v45 }
 0x274   : > { %v947_v6 = vsel %vm946_vm12, %v943_v1, %v945_v30  ;;  %v948_v58 = vsel %vm946_vm12, %v945_v30, %v943_v1  ;;  %vm1677_vm12 = vcmp.lt.s32.totalorder %v2641_v22, 94 }
 0x275   : > { %v951_v46 = vcombine.low %v948_v58, %v947_v6  ;;  %v935_v2 = vrot.slane %v928_v40, %v2649_v45 }
 0x277   : > { %v1031_v32 = vpop.permute.xlu0 %1030  ;;  %v971_v55 = vpop.permute.xlu1 %970  ;;  %v958_v56 = vrot.slane %v951_v46, %v2649_v45 }
 0x278   : > { %v973_v29 = vsel %vm972_vm13, %v969_v57, %v971_v55  ;;  %v974_v9 = vsel %vm972_vm13, %v971_v55, %v969_v57  ;;  %vm1709_vm13 = vcmp.lt.s32.totalorder %v2641_v22, 93 }
 0x279   : > { %v977_v57 = vcombine.low %v974_v9, %v973_v29 }
 0x27b   : > { %v1061_v18 = vpop.permute.xlu0 %1060  ;;  %v1003_v12 = vpop.permute.xlu1 %1002  ;;  %v984_v23 = vrot.slane %v977_v57, %v2649_v45 }
 0x27c   : > { %v1005_v3 = vsel %vm1004_vm14, %v1001_v37, %v1003_v12  ;;  %v1006_v8 = vsel %vm1004_vm14, %v1003_v12, %v1001_v37  ;;  %v877_v12 = vadd.f32 %v875_v11, %v847_v13  ;;  %vm1739_vm14 = vcmp.lt.s32.totalorder %v2641_v22, 83 }
 0x27d   : > { %v1009_v0 = vcombine.low %v1006_v8, %v1005_v3 }
 0x27e   : > { %v907_v60 = vadd.f32 %v905_v16, %v877_v12 }
 0x27f   : > { %v1091_v1 = vpop.permute.xlu0 %1090  ;;  %v1033_v30 = vpop.permute.xlu1 %1032  ;;  %v1016_v29 = vrot.slane %v1009_v0, %v2649_v45 }
 0x280   : > { %v1035_v55 = vsel %vm1034_vm15, %v1031_v32, %v1033_v30  ;;  %v1036_v59 = vsel %vm1034_vm15, %v1033_v30, %v1031_v32  ;;  %v965_v32 = vrot.slane %v958_v56, %v2649_v45  ;;  %v991_v30 = vrot.slane %v984_v23, %v2649_v45 }
 0x281   : > { %v1039_v47 = vcombine.low %v1036_v59, %v1035_v55  ;;  %v1023_v11 = vrot.slane %v1016_v29, %v2649_v45  ;;  %vm1769_vm15 = vcmp.lt.s32.totalorder %v2641_v22, 82 }
 0x283   : > { %v1121_v28 = vpop.permute.xlu0 %1120  ;;  %v1063_v6 = vpop.permute.xlu1 %1062  ;;  %v1046_v3 = vrot.slane %v1039_v47, %v2649_v45 }
 0x284   : > { %v1065_v58 = vsel %vm1064_vm0, %v1061_v18, %v1063_v6  ;;  %v1066_v37 = vsel %vm1064_vm0, %v1063_v6, %v1061_v18  ;;  %v937_v18 = vadd.f32 %v935_v2, %v907_v60  ;;  %vm1799_vm0 = vcmp.lt.s32.totalorder %v2641_v22, 81 }
 0x285   : > { %v1069_v9 = vcombine.low %v1066_v37, %v1065_v58  ;;  %v1053_v16 = vrot.slane %v1046_v3, %v2649_v45 }
 0x286   : > { %v967_v35 = vadd.f32 %v965_v32, %v937_v18 }
 0x287   : > { %v1151_v36 = vpop.permute.xlu0 %1150  ;;  %v1093_v48 = vpop.permute.xlu1 %1092  ;;  %v1076_v40 = vrot.slane %v1069_v9, %v2649_v45 }
 0x288   : > { %v1095_v17 = vsel %vm1094_vm1, %v1091_v1, %v1093_v48  ;;  %v1096_v46 = vsel %vm1094_vm1, %v1093_v48, %v1091_v1  ;;  %v993_v1 = vadd.f32 %v991_v30, %v967_v35  ;;  %vm1829_vm1 = vcmp.lt.s32.totalorder %v2641_v22, 80 }
 0x289   : > { %v1099_v8 = vcombine.low %v1096_v46, %v1095_v17  ;;  %v1083_v58 = vrot.slane %v1076_v40, %v2649_v45 }
 0x28a   : > { %v1025_v6 = vadd.f32 %v1023_v11, %v993_v1 }
 0x28b   : > { %v1181_v57 = vpop.permute.xlu0 %1180  ;;  %v1123_v55 = vpop.permute.xlu1 %1122  ;;  %v1106_v56 = vrot.slane %v1099_v8, %v2649_v45 }
 0x28c   : > { %v1125_v59 = vsel %vm1124_vm2, %v1121_v28, %v1123_v55  ;;  %v1126_v13 = vsel %vm1124_vm2, %v1123_v55, %v1121_v28  ;;  %v1055_v60 = vadd.f32 %v1053_v16, %v1025_v6  ;;  %vm1859_vm2 = vcmp.lt.s32.totalorder %v2641_v22, 79 }
 0x28d   : > { %v1129_v0 = vcombine.low %v1126_v13, %v1125_v59  ;;  %v1113_v28 = vrot.slane %v1106_v56, %v2649_v45  ;;  %v1215_v59 = vrot.slane %v1208_v25, %v2649_v45 }
 0x28e   : > { %v1085_v29 = vadd.f32 %v1083_v58, %v1055_v60 }
 0x28f   : > { %v1136_v37 = vrot.slane %v1129_v0, %v2649_v45  ;;  %v1153_v12 = vpop.permute.xlu1 %1152  ;;  %v1230_v2 = vpop.permute.xlu0 %1229  ;;  %v1222_v16 = vrot.slane %v1215_v59, %v2649_v45 }
 0x290   : > { %v1155_v23 = vsel %vm1154_vm3, %v1151_v36, %v1153_v12  ;;  %v1156_v47 = vsel %vm1154_vm3, %v1153_v12, %v1151_v36  ;;  %v1115_v3 = vadd.f32 %v1113_v28, %v1085_v29  ;;  %vm1889_vm3 = vcmp.lt.s32.totalorder %v2641_v22, 78 }
 0x291   : > { %v1159_v32 = vcombine.low %v1156_v47, %v1155_v23  ;;  %v1143_v9 = vrot.slane %v1136_v37, %v2649_v45 }
 0x293   : > { %v1166_v48 = vrot.slane %v1159_v32, %v2649_v45  ;;  %v1183_v17 = vpop.permute.xlu1 %1182  ;;  %v1260_v46 = vpop.permute.xlu0 %1259  ;;  %v1145_v36 = vadd.f32 %v1143_v9, %v1115_v3 }
 0x294   : > { %v1185_v18 = vsel %vm1184_vm4, %v1181_v57, %v1183_v17  ;;  %v1186_v30 = vsel %vm1184_vm4, %v1183_v17, %v1181_v57  ;;  %vm1915_vm4 = vcmp.lt.s32.totalorder %v2641_v22, 77 }
 0x295   : > { %v1173_v8 = vrot.slane %v1166_v48, %v2649_v45  ;;  %v1189_v35 = vcombine.low %v1186_v30, %v1185_v18 }
 0x297   : > { %v1196_v11 = vrot.slane %v1189_v35, %v2649_v45  ;;  %v1290_v40 = vpop.permute.xlu0 %1289  ;;  %v1232_v55 = vpop.permute.xlu1 %1231  ;;  %v1175_v13 = vadd.f32 %v1173_v8, %v1145_v36 }
 0x298   : > { %v1234_v6 = vsel %vm1233_vm5, %v1230_v2, %v1232_v55  ;;  %v1235_v58 = vsel %vm1233_vm5, %v1232_v55, %v1230_v2 }
 0x299   : > { %v1203_v1 = vrot.slane %v1196_v11, %v2649_v45  ;;  %v1238_v24 = vcombine.low %v1234_v6, %v1235_v58 }
 0x29b   : > { %v1205_v57 = vadd.f32 %v1203_v1, %v1175_v13  ;;  %v1320_v56 = vpop.permute.xlu0 %1319  ;;  %v1262_v0 = vpop.permute.xlu1 %1261  ;;  %v1245_v32 = vrot.slane %v1238_v24, %v2649_v45 }
 0x29c   : > { %v1264_v12 = vsel %vm1263_vm6, %v1260_v46, %v1262_v0  ;;  %v1265_v21 = vsel %vm1263_vm6, %v1262_v0, %v1260_v46 }
 0x29d   : > { %v1224_v37 = vadd.f32 %v1222_v16, %v1205_v57  ;;  %v1268_v28 = vcombine.low %v1264_v12, %v1265_v21  ;;  %v1252_v46 = vrot.slane %v1245_v32, %v2649_v45 }
 0x29f   : > { %v1350_v25 = vpop.permute.xlu0 %1349  ;;  %v1292_v23 = vpop.permute.xlu1 %1291  ;;  %v1275_v18 = vrot.slane %v1268_v28, %v2649_v45  ;;  %v1254_v13 = vadd.f32 %v1252_v46, %v1224_v37  ;;  %v1483_v46 = vrot.slane %v1476_v31, %v2649_v45  ;;  %v1520_v31 = vrot.slane %v1513_v51, %v2649_v45 }
 0x2a0   : > { %v1294_v47 = vsel %vm1293_vm7, %v1290_v40, %v1292_v23  ;;  %v1295_v60 = vsel %vm1293_vm7, %v1292_v23, %v1290_v40 }
 0x2a1   : > { %v1298_v29 = vcombine.low %v1294_v47, %v1295_v60  ;;  %v1282_v40 = vrot.slane %v1275_v18, %v2649_v45 }
 0x2a3   : > { %v1380_v9 = vpop.permute.xlu0 %1379  ;;  %v1322_v48 = vpop.permute.xlu1 %1321  ;;  %v1305_v3 = vrot.slane %v1298_v29, %v2649_v45  ;;  %v1284_v58 = vadd.f32 %v1282_v40, %v1254_v13 }
 0x2a4   : > { %v1324_v17 = vsel %vm1323_vm8, %v1320_v56, %v1322_v48  ;;  %v1325_v2 = vsel %vm1323_vm8, %v1322_v48, %v1320_v56 }
 0x2a5   : > { %v1328_v30 = vcombine.low %v1324_v17, %v1325_v2  ;;  %v1312_v1 = vrot.slane %v1305_v3, %v2649_v45 }
 0x2a7   : > { %v1410_v8 = vpop.permute.xlu0 %1409  ;;  %v1352_v35 = vpop.permute.xlu1 %1351  ;;  %v1335_v55 = vrot.slane %v1328_v30, %v2649_v45  ;;  %v1314_v24 = vadd.f32 %v1312_v1, %v1284_v58 }
 0x2a8   : > { %v1354_v36 = vsel %vm1353_vm9, %v1350_v25, %v1352_v35  ;;  %v1355_v11 = vsel %vm1353_vm9, %v1352_v35, %v1350_v25 }
 0x2a9   : > { %v1358_v59 = vcombine.low %v1354_v36, %v1355_v11  ;;  %v1342_v12 = vrot.slane %v1335_v55, %v2649_v45  ;;  %v1490_v11 = vrot.slane %v1483_v46, %v2649_v45 }
 0x2ab   : > { %v1365_v57 = vrot.slane %v1358_v59, %v2649_v45  ;;  %v1674_v16 = vpop.permute.xlu0 %1673  ;;  %v1382_v56 = vpop.permute.xlu1 %1381  ;;  %v1344_v32 = vadd.f32 %v1342_v12, %v1314_v24 }
 0x2ac   : > { %v1384_v0 = vsel %vm1383_vm10, %v1380_v9, %v1382_v56  ;;  %v1385_v6 = vsel %vm1383_vm10, %v1382_v56, %v1380_v9  ;;  %v1451_v9 = vrot.slane %v1444_v54, %v2649_v45 }
 0x2ad   : > { %v1388_v21 = vcombine.low %v1384_v0, %v1385_v6  ;;  %v1372_v25 = vrot.slane %v1365_v57, %v2649_v45  ;;  %v1663_v0 = vrot.slane %v3009_v7, %v2649_v45 }
 0x2ae   : > { %v1458_v35 = vrot.slane %v1451_v9, %v2649_v45 }
 0x2af   : > { %v1395_v23 = vrot.slane %v1388_v21, %v2649_v45  ;;  %v1706_v37 = vpop.permute.xlu0 %1705  ;;  %v1412_v47 = vpop.permute.xlu1 %1411  ;;  %v1374_v17 = vadd.f32 %v1372_v25, %v1344_v32 }
 0x2b0   : > { %v1414_v60 = vsel %vm1413_vm11, %v1410_v8, %v1412_v47  ;;  %v1415_v28 = vsel %vm1413_vm11, %v1412_v47, %v1410_v8 }
 0x2b1   : > { %v1402_v29 = vrot.slane %v1395_v23, %v2649_v45  ;;  %v1418_v48 = vcombine.low %v1414_v60, %v1415_v28  ;;  %v1670_v60 = vrot.slane %v1663_v0, %v2649_v45 }
 0x2b3   : > { %v1425_v2 = vrot.slane %v1418_v48, %v2649_v45  ;;  %v1736_v18 = vpop.permute.xlu0 %1735  ;;  %v1676_v30 = vpop.permute.xlu1 %1675  ;;  %v1404_v3 = vadd.f32 %v1402_v29, %v1374_v17 }
 0x2b4   : > { %v1678_v55 = vsel %vm1677_vm12, %v1674_v16, %v1676_v30  ;;  %v1679_v59 = vsel %vm1677_vm12, %v1676_v30, %v1674_v16 }
 0x2b5   : > { %v1432_v8 = vrot.slane %v1425_v2, %v2649_v45  ;;  %v1682_v57 = vcombine.low %v1678_v55, %v1679_v59 }
 0x2b7   : > { %v1434_v52 = vadd.f32 %v1432_v8, %v1404_v3  ;;  %v1766_v54 = vpop.permute.xlu0 %1765  ;;  %v1708_v36 = vpop.permute.xlu1 %1707  ;;  %v1689_v24 = vrot.slane %v1682_v57, %v2649_v45 }
 0x2b8   : > { %v1710_v13 = vsel %vm1709_vm13, %v1706_v37, %v1708_v36  ;;  %v1711_v61 = vsel %vm1709_vm13, %v1708_v36, %v1706_v37 }
 0x2b9   : > { %v1460_v27 = vadd.f32 %v1458_v35, %v1434_v52  ;;  %v1714_v58 = vcombine.low %v1710_v13, %v1711_v61  ;;  %v1696_v29 = vrot.slane %v1689_v24, %v2649_v45  ;;  %v1947_v24 = vsub.s32 0, %v2645_v34 }
 0x2bb   : > { %v1492_v33 = vadd.f32 %v1490_v11, %v1460_v27  ;;  %v1796_v39 = vpop.permute.xlu0 %1795  ;;  %v1738_v40 = vpop.permute.xlu1 %1737  ;;  %v1721_v20 = vrot.slane %v1714_v58, %v2649_v45 }
 0x2bc   : > { %v1740_v56 = vsel %vm1739_vm14, %v1736_v18, %v1738_v40  ;;  %v1741_v4 = vsel %vm1739_vm14, %v1738_v40, %v1736_v18 }
 0x2bd   : > { %v1522_v53 = vadd.f32 %v1520_v31, %v1492_v33  ;;  %v1744_v25 = vcombine.low %v1740_v56, %v1741_v4  ;;  %v1728_v3 = vrot.slane %v1721_v20, %v2649_v45 }
 0x2bf   : > { %v1552_v1 = vadd.f32 %v1550_v49, %v1522_v53  ;;  %v1768_v16 = vpop.permute.xlu1 %1767  ;;  %v1826_v12 = vpop.permute.xlu0 %1825  ;;  %v1751_v48 = vrot.slane %v1744_v25, %v2649_v45  ;;  %v1951_v25 = vsub.s32 1, %v2645_v34 }
 0x2c0   : > { %v1770_v21 = vsel %vm1769_vm15, %v1766_v54, %v1768_v16  ;;  %v1771_v14 = vsel %vm1769_vm15, %v1768_v16, %v1766_v54 }
 0x2c1   : > { %v1582_v6 = vadd.f32 %v1580_v62, %v1552_v1  ;;  %v1774_v28 = vcombine.low %v1770_v21, %v1771_v14  ;;  %v1758_v52 = vrot.slane %v1751_v48, %v2649_v45 }
 0x2c3   : > { %v1612_v10 = vadd.f32 %v1610_v5, %v1582_v6  ;;  %v1798_v23 = vpop.permute.xlu1 %1797  ;;  %v1856_v9 = vpop.permute.xlu0 %1855  ;;  %v1781_v8 = vrot.slane %v1774_v28, %v2649_v45 }
 0x2c4   : > { %v1800_v37 = vsel %vm1799_vm0, %v1796_v39, %v1798_v23  ;;  %v1801_v47 = vsel %vm1799_vm0, %v1798_v23, %v1796_v39 }
 0x2c5   : > { %v1642_v19 = vadd.f32 %v1640_v15, %v1612_v10  ;;  %v1804_v17 = vcombine.low %v1800_v37, %v1801_v47  ;;  %v1788_v31 = vrot.slane %v1781_v8, %v2649_v45 }
 0x2c7   : > { %v1672_v32 = vadd.f32 %v1670_v60, %v1642_v19  ;;  %v1828_v2 = vpop.permute.xlu1 %1827  ;;  %v1811_v54 = vrot.slane %v1804_v17, %v2649_v45  ;;  %v1886_v38 = vpop.permute.xlu0 %1885 }
 0x2c8   : > { %v1830_v18 = vsel %vm1829_vm1, %v1826_v12, %v1828_v2  ;;  %v1831_v30 = vsel %vm1829_vm1, %v1828_v2, %v1826_v12 }
 0x2c9   : > { %v1698_v46 = vadd.f32 %v1696_v29, %v1672_v32  ;;  %v1834_v35 = vcombine.low %v1830_v18, %v1831_v30  ;;  %v1818_v55 = vrot.slane %v1811_v54, %v2649_v45 }
 0x2cb   : > { %v1730_v51 = vadd.f32 %v1728_v3, %v1698_v46  ;;  %v1858_v36 = vpop.permute.xlu1 %1857  ;;  %v1841_v33 = vrot.slane %v1834_v35, %v2649_v45  ;;  %v1912_v63 = vpop.permute.xlu0 %1911 }
 0x2cc   : > { %v1860_v11 = vsel %vm1859_vm2, %v1856_v9, %v1858_v36  ;;  %v1861_v26 = vsel %vm1859_vm2, %v1858_v36, %v1856_v9 }
 0x2cd   : > { %v1760_v27 = vadd.f32 %v1758_v52, %v1730_v51  ;;  %v1864_v39 = vcombine.low %v1860_v11, %v1861_v26  ;;  %v1848_v61 = vrot.slane %v1841_v33, %v2649_v45 }
 0x2cf   : > { %v1790_v40 = vadd.f32 %v1788_v31, %v1760_v27  ;;  %v1871_v59 = vrot.slane %v1864_v39, %v2649_v45  ;;  %v1888_v49 = vpop.permute.xlu1 %1887 }
 0x2d0   : > { %v1890_v50 = vsel %vm1889_vm3, %v1886_v38, %v1888_v49  ;;  %v1891_v53 = vsel %vm1889_vm3, %v1888_v49, %v1886_v38 }
 0x2d1   : > { %v1820_v13 = vadd.f32 %v1818_v55, %v1790_v40  ;;  %v1894_v62 = vcombine.low %v1890_v50, %v1891_v53  ;;  %v1878_v57 = vrot.slane %v1871_v59, %v2649_v45 }
 0x2d3   : > { %v1850_v1 = vadd.f32 %v1848_v61, %v1820_v13  ;;  %v1901_v16 = vrot.slane %v1894_v62, %v2649_v45  ;;  %v1914_v56 = vpop.permute.xlu1 %1913 }
 0x2d4   : > { %v1916_v4 = vsel %vm1915_vm4, %v1912_v63, %v1914_v56  ;;  %v1917_v5 = vsel %vm1915_vm4, %v1914_v56, %v1912_v63 }
 0x2d5   : > { %v1880_v7 = vadd.f32 %v1878_v57, %v1850_v1  ;;  %v1908_v0 = vrot.slane %v1901_v16, %v2649_v45  ;;  %v1920_v6 = vcombine.low %v1916_v4, %v1917_v5 }
 0x2d7   : > { %v1927_v58 = vrot.slane %v1920_v6, %v2649_v45  ;;  %v1910_v12 = vadd.f32 %v1908_v0, %v1880_v7 }
 0x2d9   : > { %v1934_v21 = vrot.slane %v1927_v58, %v2649_v45 }
 0x2db   : > { %v1936_v22 = vadd.f32 %v1934_v21, %v1910_v12 }
 0x2dd   : > { %v2080_v14 = vmul.f32 -1.442695, %v1936_v22 }
 0x2df   : > { %2204 = vpow2.f32 %v2080_v14 }
 0x2e9   : > { %v2205_v15 = vpop.eup %2204 }
 0x2ea   : > { %v1940_v10 = vadd.f32 1.0, %v2205_v15 }
 0x2ec   : > { %2206 = vrcp.f32 %v1940_v10 }
 0x2f6   : > { %v2207_v23 = vpop.eup %2206 }
 0x2f7   : > { %v1943_v37 = vadd.f32 1.0, %v2207_v23 }
 0x2f9   : > { %v1948_v47 = vrot.slane %v1943_v37, %v1947_v24  ;;  %v1952_v45 = vrot.slane %v1943_v37, %v1951_v25 }
 0x2fb   : > { %v1955_v60 = vmul.f32 %v1948_v47, %v2512_v41  ;;  %v1956_v19 = vmul.f32 %v1952_v45, %v2514_v42  ;;  %v1957_v34 = vmul.f32 %v1948_v47, %v2516_v43  ;;  %v1958_v20 = vmul.f32 %v1952_v45, %v2518_v44 }
 0x2fd   : > { %1959 = vst [vmem:[%s257_s15] sm:$0xff] %v1955_v60  ;;  %1960 = vst [vmem:[%s257_s15 + $0x8] sm:$0xff] %v1956_v19 }
 0x2fe   : > { %1961 = vst [vmem:[%s257_s15 + $0x10] sm:$0xff] %v1957_v34  ;;  %1962 = vst [vmem:[%s257_s15 + $0x18] sm:$0xff] %v1958_v20 }
 0x2ff   : > { %2251 = shalt.err (!%p2248_p3)
}
 0x300   : > { %s2252_s17 = scalar_lea.hbm %s2947_s7, 512  ;;  %s2256_s12 = scalar_lea.hbm %s3002_s5, 2560 }
 0x301   : > { %p2253_p4 = scmp.ne.s32.totalorder %s2947_s7, %s2252_s17  ;;  %p2257_p2 = scmp.lt.u32.totalorder %s2947_s7, %s3002_s5 }
 0x302   : > { %p2258_p7 = scmp.lt.u32.totalorder %s2256_s12, %s2252_s17  ;;  %p2260_p6 = scmp.lt.u32.totalorder %s2252_s17, %s2947_s7 }
 0x303   : > { %p2254_p5 = pnand %p2253_p4, %p3010_p11 }
 0x304   : > { %p2259_p10 = por %p2258_p7, %p2257_p2 }
 0x305   : > { %p2255_p0 = pneg %p2254_p5 }
 0x306   : > { %p2261_p12 = por %p2260_p6, %p2259_p10 }
 0x308   : > { %p2262_p8 = pnand %p2261_p12, %p2255_p0 }
 0x30a   : > { %2265 = shalt.err (!%p2262_p8)
}
 0x30b   : > { %s2361_s8 = smov 256  }
 0x30c   : > { %2097 = dma.vmem_to_hbm [thread:$0]  (%p3010_p11), %s2953_s16, 512, %s2947_s7, %s1964_s22, %s2361_s8, %s2361_s8, %s2336_s10  }
 0x30d PF: > { %p2108_p9 = scmp.ge.s32.totalorder %s2304_s21, 2  ;;  %s1992_s29 = sand.u32 1, %s2292_s18  }
 0x30e   : > { %p3011_p13 = scmp.ne.s32.totalorder %s3007_s6, 0  ;;  %s1993_s25 = scalar_lea.sflag [#allocation4], %s1992_s29 }
 0x310   : > { %p2104_p1 = pnand %p2108_p9, %p3011_p13 }
 0x312   : > { %2287 = dma.done.wait (!%p2104_p1), %s1993_s25, 512  }
 0x313   : > { %2289 = vsyncadd (!%p2104_p1), %s1993_s25, 4294966784  ;;  %p18_p3 = scmp.ge.s32.totalorder %s2417_s24, 7   ;;  %s3012_s18 = smov %s2296_s19 }
 0x314   : > { %s3013_s19 = smov %s2300_s20  ;;  %s3014_s20 = smov %s2429_s27 }
 0x315   : > { %s3015_s21 = smov %s2417_s24  ;;  %20 = sbr.rel (!%p18_p3) target bundleno = 5 (0x5), region = 88 }
 0x31c   :  { %1998 = vsyncpa [#allocation3], 1 }
 0x31d   :  { %2000 = vsyncpa [#allocation3 + $0x1], 1 }
 0x31e   :  { %2001 = vsyncpa [#allocation4], 1 }
 0x31f   :  { %2003 = vsyncpa [#allocation4 + $0x1], 1 }

</bundles_post_ra>
